<compile_context>
chip_gen: v6e
topology: v6e:2x2x1
jax: 0.10.0
libtpu: 0.0.40
codegen_flags: <defaults>
</compile_context>

<pallas_src>
import functools

import jax
import jax.numpy as jnp
from jax.experimental import pallas as pl
from jax.experimental.pallas import tpu as pltpu


# ----------------------------------------------------------------------------
# Helpers
# ----------------------------------------------------------------------------
def _ceil_to(x, m):
    return (x + m - 1) // m * m


def _pick_tile(dim, cap):
    """(tile, padded_dim): full-extent block for small dims, `cap` otherwise."""
    if dim <= cap:
        return dim, dim
    return cap, _ceil_to(dim, cap)


def _pick_tile_m(dim, cap):
    """Like _pick_tile, but expose >= 2 blocks on the (parallel) M axis when
    possible, so v7x's second TensorCore gets work at small channel counts."""
    if dim > cap:
        return cap, _ceil_to(dim, cap)
    if dim >= 16 and dim % 16 == 0:
        return dim // 2, dim            # two 8-aligned blocks, no padding
    return dim, dim


# ----------------------------------------------------------------------------
# Fused conv-matmul (+ bias + InstanceNorm + LeakyReLU) Pallas kernel
# ----------------------------------------------------------------------------
def _conv_fused_kernel(*refs, n_pairs, fuse_norm, use_acc, n_inst, spatial,
                       eps, slope):
    """out = sum_i w_i @ p_i + bias, optionally + InstanceNorm + LeakyReLU.

    refs = [w_0, p_0, ..., w_{n-1}, p_{n-1}, bias, (gamma, beta)?, out, (acc)?]

    K-tiled with the reduction axis innermost ("arbitrary").  Accumulation is
    f32: directly in the resident out block when out is f32, otherwise in a
    VMEM scratch.  With `fuse_norm`, the finalize step computes per-(row,
    instance) mean/var over `spatial`-wide column segments of the resident
    tile (two-pass, f32), applies affine + LeakyReLU, and stores once.
    """
    n_in = 2 * n_pairs + 1 + (2 if fuse_norm else 0)
    o_ref = refs[n_in]
    acc_ref = refs[n_in + 1] if use_acc else o_ref
    b_ref = refs[2 * n_pairs]

    @pl.when(pl.program_id(2) == 0)
    def _init():
        acc_ref[...] = jnp.zeros_like(acc_ref)

    part = jnp.dot(refs[0][...], refs[1][...],
                   preferred_element_type=jnp.float32)
    for i in range(1, n_pairs):
        part = part + jnp.dot(refs[2 * i][...], refs[2 * i + 1][...],
                              preferred_element_type=jnp.float32)
    acc_ref[...] += part

    @pl.when(pl.program_id(2) == pl.num_programs(2) - 1)
    def _finalize():
        y = acc_ref[...] + b_ref[...]                       # (tm, tn) f32
        if fuse_norm:
            g_ref = refs[2 * n_pairs + 1]
            bb_ref = refs[2 * n_pairs + 2]
            col = jax.lax.broadcasted_iota(jnp.int32, y.shape, 1)
            inv_s = 1.0 / spatial
            # Column segment n holds instance n of every channel row.
            mean_b = jnp.zeros_like(y)
            for n in range(n_inst):
                m = jnp.logical_and(col >= n * spatial, col < (n + 1) * spatial)
                s1 = jnp.sum(jnp.where(m, y, 0.0), axis=1, keepdims=True)
                mean_b = jnp.where(m, s1 * inv_s, mean_b)
            xc = y - mean_b
            var_b = jnp.zeros_like(y)
            for n in range(n_inst):
                m = jnp.logical_and(col >= n * spatial, col < (n + 1) * spatial)
                s2 = jnp.sum(jnp.where(m, xc * xc, 0.0), axis=1, keepdims=True)
                var_b = jnp.where(m, s2 * inv_s, var_b)
            y = xc * jax.lax.rsqrt(var_b + eps) * g_ref[...] + bb_ref[...]
            y = jnp.where(y >= 0.0, y, slope * y)
        o_ref[...] = y.astype(o_ref.dtype)


def matmul_bias_act(ws, ps, bias, *, gamma=None, beta=None, n_inst=1,
                    fuse_norm=False, out_dtype=jnp.float32, eps=1e-5,
                    slope=0.01, tm_cap=256, tn_cap=2048, tk_cap=512):
    """out(Mr, Nc) = sum_i ws[i] @ ps[i] + bias[:, None] (+ fused IN+LeakyReLU).

    Rows = output channels, columns = N*Ho*Wo (lane-dense spatial axis).
    Operands are fed to the MXU in bf16; accumulation is f32.
    """
    n_pairs = len(ws)
    Mr, K = ws[0].shape
    Nc = ps[0].shape[1]
    for w, p_ in zip(ws, ps):
        assert w.shape == (Mr, K), "all K segments must share (Mr, K)"
        assert p_.shape == (K, Nc)

    tm, Mp = _pick_tile_m(Mr, tm_cap)
    tn, Np = _pick_tile(Nc, tn_cap)
    tk, Kp = _pick_tile(K, tk_cap)

    spatial = 0
    if fuse_norm:
        # Fusion needs the full spatial extent resident in a single N tile.
        # TODO(synk): fall back to a separate lane-dense norm pass when
        # N*Ho*Wo exceeds tn_cap (very large nnU-Net stages).
        assert Nc % n_inst == 0 and tn == Nc and Np == Nc
        spatial = Nc // n_inst

    ws = [w.astype(jnp.bfloat16) for w in ws]
    ps = [p_.astype(jnp.bfloat16) for p_ in ps]
    # No padding triggers at the demo shapes (blocks are full-extent).
    if (Mp, Kp) != (Mr, K):
        ws = [jnp.pad(w, ((0, Mp - Mr), (0, Kp - K))) for w in ws]
    if (Kp, Np) != (K, Nc):
        ps = [jnp.pad(p_, ((0, Kp - K), (0, Np - Nc))) for p_ in ps]

    vecs = [bias.astype(jnp.float32).reshape(Mr, 1)]
    if fuse_norm:
        vecs += [gamma.astype(jnp.float32).reshape(Mr, 1),
                 beta.astype(jnp.float32).reshape(Mr, 1)]
    if Mp != Mr:
        vecs = [jnp.pad(v, ((0, Mp - Mr), (0, 0))) for v in vecs]

    use_acc = jnp.dtype(out_dtype) != jnp.dtype(jnp.float32)
    grid = (Mp // tm, Np // tn, Kp // tk)

    in_specs, operands = [], []
    for w, p_ in zip(ws, ps):
        in_specs += [pl.BlockSpec((tm, tk), lambda i, j, k: (i, k)),
                     pl.BlockSpec((tk, tn), lambda i, j, k: (k, j))]
        operands += [w, p_]
    in_specs += [pl.BlockSpec((tm, 1), lambda i, j, k: (i, 0)) for _ in vecs]
    operands += vecs

    cost = pl.CostEstimate(
        flops=int(2 * n_pairs * Mp * Np * Kp),
        transcendentals=int(Mp * n_inst) if fuse_norm else 0,
        bytes_accessed=int(n_pairs * (Mp * Kp + Kp * Np) * 2
                           + Mp * Np * jnp.dtype(out_dtype).itemsize
                           + len(vecs) * Mp * 4))

    kernel = functools.partial(
        _conv_fused_kernel, n_pairs=n_pairs, fuse_norm=fuse_norm,
        use_acc=use_acc, n_inst=n_inst, spatial=spatial, eps=eps, slope=slope)

    out = pl.pallas_call(
        kernel,
        out_shape=jax.ShapeDtypeStruct((Mp, Np), out_dtype),
        grid=grid,
        in_specs=in_specs,
        out_specs=pl.BlockSpec((tm, tn), lambda i, j, k: (i, j)),
        scratch_shapes=([pltpu.VMEM((tm, tn), jnp.float32)] if use_acc else []),
        compiler_params=pltpu.CompilerParams(
            dimension_semantics=("parallel", "parallel", "arbitrary"),
            vmem_limit_bytes=32 << 20),
        cost_estimate=cost,
    )(*operands)

    if (Mp, Np) != (Mr, Nc):
        out = out[:Mr, :Nc]
    return out


# ----------------------------------------------------------------------------
# Convolution wrappers on (C, N, H, W) slabs
# ----------------------------------------------------------------------------
def _im2col_cnhw(x_slab, kh, kw, stride, padding):
    """Tap extraction into a (kh*kw*C, N*Ho*Wo) bf16 patch matrix.

    TODO(synk): fold the tap extraction into the Pallas matmul's K reduction
    (halo'd input block + in-kernel shifted/strided reads) to avoid
    materializing kh*kw shifted copies in HBM; bf16 extraction halves that
    traffic for now.
    """
    C, N, H, W = x_slab.shape
    Ho = (H + 2 * padding - kh) // stride + 1
    Wo = (W + 2 * padding - kw) // stride + 1
    xp = jnp.pad(x_slab.astype(jnp.bfloat16),
                 ((0, 0), (0, 0), (padding, padding), (padding, padding)))
    taps = []
    for i in range(kh):
        for j in range(kw):
            taps.append(xp[:, :, i:i + stride * Ho:stride, j:j + stride * Wo:stride])
    pat = jnp.stack(taps, axis=0)                      # (kh*kw, C, N, Ho, Wo)
    return pat.reshape(kh * kw * C, N * Ho * Wo), Ho, Wo


def conv_in_lrelu_slab(x_slabs, w_oihw, bias, gamma, beta, *, stride, padding,
                       out_dtype=jnp.bfloat16):
    """Conv2d + InstanceNorm + LeakyReLU on (C,N,H,W) slabs — ONE pallas_call.

    `x_slabs` is a list of slabs whose channels are (virtually) concatenated:
    the channel concat is folded into the K reduction instead of materializing
    the concatenated activation tensor.
    """
    Cout, Cin, kh, kw = w_oihw.shape
    csz = [s.shape[0] for s in x_slabs]
    assert sum(csz) == Cin and len(set(csz)) == 1, \
        "K-split conv expects equal-channel source slabs"
    N = x_slabs[0].shape[1]

    ws, ps, Ho, Wo, off = [], [], None, None, 0
    for s in x_slabs:
        c = s.shape[0]
        pat, Ho, Wo = _im2col_cnhw(s, kh, kw, stride, padding)
        w_part = jnp.transpose(w_oihw[:, off:off + c], (0, 2, 3, 1))
        ws.append(w_part.reshape(Cout, kh * kw * c))
        ps.append(pat)
        off += c

    out = matmul_bias_act(ws, ps, bias, gamma=gamma, beta=beta, n_inst=N,
                          fuse_norm=True, out_dtype=out_dtype)
    return out.reshape(Cout, N, Ho, Wo)


def conv1x1_slab(x_slab, w_oihw, bias):
    """1x1 supervision head: (Cls, C) @ (C, N*H*W) + bias, f32 output.

    Note: operands are fed to the MXU in bf16, so head logits differ from an
    f32 PyTorch Conv2d by bf16 rounding.
    """
    C, N, H, W = x_slab.shape
    Cout = w_oihw.shape[0]
    out = matmul_bias_act([w_oihw.reshape(Cout, C)],
                          [x_slab.reshape(C, N * H * W)],
                          bias, fuse_norm=False, out_dtype=jnp.float32)
    return out.reshape(Cout, N, H, W)


def conv_transpose_2x2_s2_slab(x_slab, w_iohw, bias):
    """PyTorch ConvTranspose2d (kernel=2, stride=2); weight is (Cin, Cout, 2, 2)."""
    Cin, N, H, W = x_slab.shape
    Cin2, Cout, kh, kw = w_iohw.shape
    assert Cin == Cin2 and kh == 2 and kw == 2
    w_mat = jnp.transpose(w_iohw, (2, 3, 1, 0)).reshape(kh * kw * Cout, Cin)
    y = matmul_bias_act([w_mat], [x_slab.reshape(Cin, N * H * W)],
                        jnp.tile(bias, (kh * kw,)),
                        fuse_norm=False, out_dtype=jnp.bfloat16)
    y = y.reshape(kh, kw, Cout, N, H, W)
    # TODO(synk): fold this small spatial interleave into the consumer's tap
    # gather (or the final NCHW transpose) instead of a standalone 6-D transpose.
    return jnp.transpose(y, (2, 3, 4, 0, 5, 1)).reshape(Cout, N, H * kh, W * kw)


# ----------------------------------------------------------------------------
# SkipLayer forward
# ----------------------------------------------------------------------------
def skip_layer_forward(x_nchw, p):
    # NCHW -> (C, N, H, W) slab; the only activation transposes in the forward
    # pass are this entry transpose and the exit transposes below.
    x = jnp.transpose(x_nchw, (1, 0, 2, 3))

    # downout = self.downsample(x): Conv3x3 s2 + IN + LeakyReLU (one kernel)
    downout = conv_in_lrelu_slab([x], p["down_w"], p["down_b"],
                                 p["down_g"], p["down_beta"],
                                 stride=2, padding=1, out_dtype=jnp.bfloat16)

    # e_heads[index] = self.enc_head(downout)   (super_head is None)
    e_head = conv1x1_slab(downout, p["enc_w"], p["enc_b"])

    # nextout = self.next_layer(downout): Conv3x3 s2 + IN + LeakyReLU (one kernel)
    nextout = conv_in_lrelu_slab([downout], p["next_w"], p["next_b"],
                                 p["next_g"], p["next_beta"],
                                 stride=2, padding=1, out_dtype=jnp.bfloat16)

    # d_heads[index] = self.dec_head(nextout)
    d_head = conv1x1_slab(nextout, p["dec_w"], p["dec_b"])

    # upout = self.upsample(nextout, downout): ConvTranspose 2x2 s2, then the
    # Conv3x3 s1 over the (virtual) concat [up, downout] as a K-split
    # accumulation, + IN + LeakyReLU (one kernel).
    up = conv_transpose_2x2_s2_slab(nextout, p["up_tw"], p["up_tb"])
    upout = conv_in_lrelu_slab([up, downout], p["up_w"], p["up_b"],
                               p["up_g"], p["up_beta"],
                               stride=1, padding=1, out_dtype=jnp.float32)

    to_nchw = lambda t: jnp.transpose(t, (1, 0, 2, 3))
    return to_nchw(upout), to_nchw(e_head), to_nchw(d_head)


def init_params(key, c_in=4, c1=8, c2=16, num_classes=3):
    ks = jax.random.split(key, 16)
    n = lambda k, shape: (0.1 * jax.random.normal(k, shape)).astype(jnp.float32)
    return {
        # downsample block
        "down_w": n(ks[0], (c1, c_in, 3, 3)), "down_b": n(ks[1], (c1,)),
        "down_g": 1.0 + n(ks[2], (c1,)), "down_beta": n(ks[3], (c1,)),
        # enc head (1x1)
        "enc_w": n(ks[4], (num_classes, c1, 1, 1)), "enc_b": n(ks[5], (num_classes,)),
        # next_layer / bottleneck block
        "next_w": n(ks[6], (c2, c1, 3, 3)), "next_b": n(ks[7], (c2,)),
        "next_g": 1.0 + n(ks[8], (c2,)), "next_beta": n(ks[9], (c2,)),
        # dec head (1x1)
        "dec_w": n(ks[10], (num_classes, c2, 1, 1)), "dec_b": n(ks[11], (num_classes,)),
        # upsample block
        "up_tw": n(ks[12], (c2, c1, 2, 2)), "up_tb": n(ks[13], (c1,)),
        "up_w": n(ks[14], (c1, 2 * c1, 3, 3)), "up_b": n(ks[15], (c1,)),
        "up_g": jnp.ones((c1,), jnp.float32), "up_beta": jnp.zeros((c1,), jnp.float32),
    }


if __name__ == "__main__":
    key = jax.random.PRNGKey(0)
    kx, kp = jax.random.split(key)
    x = jax.random.normal(kx, (2, 4, 16, 16), dtype=jnp.float32)  # NCHW like PyTorch
    params = init_params(kp)

    fwd = jax.jit(skip_layer_forward)
    upout, e_head, d_head = fwd(x, params)
    jax.block_until_ready((upout, e_head, d_head))

    assert upout.shape == (2, 8, 8, 8)
    assert e_head.shape == (2, 3, 8, 8)
    assert d_head.shape == (2, 3, 4, 4)
    assert bool(jnp.all(jnp.isfinite(upout)))
    assert bool(jnp.all(jnp.isfinite(e_head)))
    assert bool(jnp.all(jnp.isfinite(d_head)))
    print("KERNEL_OK")
</pallas_src>

<mosaic_0001>
module attributes {stable_mosaic.version = 11 : i64} {
  func.func @_conv_fused_kernel(%arg0: i32, %arg1: i32, %arg2: i32, %arg3: memref<8x36xbf16, #tpu.memory_space<vmem>>, %arg4: memref<36x128xbf16, #tpu.memory_space<vmem>>, %arg5: memref<8x1xf32, #tpu.memory_space<vmem>>, %arg6: memref<8x1xf32, #tpu.memory_space<vmem>>, %arg7: memref<8x1xf32, #tpu.memory_space<vmem>>, %arg8: memref<8x128xbf16, #tpu.memory_space<vmem>>, %arg9: memref<8x128xf32, #tpu.memory_space<vmem>>) attributes {dimension_semantics = [#tpu.dimension_semantics<parallel>, #tpu.dimension_semantics<parallel>, #tpu.dimension_semantics<arbitrary>], iteration_bounds = array<i64: 1, 1, 1>, scalar_prefetch = 0 : i64, scratch_operands = 1 : i64, tpu.core_type = #tpu.core_type<tc>, window_params = [{transform_indices = @transform_0, window_bounds = array<i64: 8, 36>}, {transform_indices = @transform_1, window_bounds = array<i64: 36, 128>}, {transform_indices = @transform_2, window_bounds = array<i64: 8, 1>}, {transform_indices = @transform_3, window_bounds = array<i64: 8, 1>}, {transform_indices = @transform_4, window_bounds = array<i64: 8, 1>}, {transform_indices = @transform_5, window_bounds = array<i64: 8, 128>}]} {
    %c0_i32 = arith.constant 0 : i32
    %0 = arith.cmpi eq, %arg2, %c0_i32 : i32
    %1 = arith.extui %0 : i1 to i32
    %c0_i32_0 = arith.constant 0 : i32
    %2 = arith.cmpi ne, %1, %c0_i32_0 : i32
    scf.if %2 {
      %cst_10 = arith.constant 0.000000e+00 : f32
      %12 = vector.broadcast %cst_10 : f32 to vector<8x128xf32>
      %c0_11 = arith.constant 0 : index
      %c0_12 = arith.constant 0 : index
      %13 = vector.load %arg9[%c0_11, %c0_12] : memref<8x128xf32, #tpu.memory_space<vmem>>, vector<8x128xf32>
      tpu.vector_store %arg9[%c0_11, %c0_12], %12 {strides = array<i32>} : memref<8x128xf32, #tpu.memory_space<vmem>>, vector<8x128xf32>,
    } else {
    }
    %c0 = arith.constant 0 : index
    %c0_1 = arith.constant 0 : index
    %3 = vector.load %arg3[%c0, %c0_1] : memref<8x36xbf16, #tpu.memory_space<vmem>>, vector<8x36xbf16>
    %c0_2 = arith.constant 0 : index
    %c0_3 = arith.constant 0 : index
    %4 = vector.load %arg4[%c0_2, %c0_3] : memref<36x128xbf16, #tpu.memory_space<vmem>>, vector<36x128xbf16>
    %cst = arith.constant dense<0.000000e+00> : vector<8x128xf32>
    %5 = tpu.matmul %3, %4, %cst {dimension_numbers = #tpu.dot_dimension_numbers<[1], [0], [0], [1], [0, 0, 1, 1], [], []>} : vector<8x36xbf16>, vector<36x128xbf16>, vector<8x128xf32> -> vector<8x128xf32>
    %c0_4 = arith.constant 0 : index
    %c0_5 = arith.constant 0 : index
    %6 = vector.load %arg9[%c0_4, %c0_5] : memref<8x128xf32, #tpu.memory_space<vmem>>, vector<8x128xf32>
    %7 = arith.addf %6, %5 : vector<8x128xf32>
    %c0_6 = arith.constant 0 : index
    %c0_7 = arith.constant 0 : index
    %8 = vector.load %arg9[%c0_6, %c0_7] : memref<8x128xf32, #tpu.memory_space<vmem>>, vector<8x128xf32>
    tpu.vector_store %arg9[%c0_6, %c0_7], %7 {strides = array<i32>} : memref<8x128xf32, #tpu.memory_space<vmem>>, vector<8x128xf32>,
    %c0_i32_8 = arith.constant 0 : i32
    %9 = arith.cmpi eq, %arg2, %c0_i32_8 : i32
    %10 = arith.extui %9 : i1 to i32
    %c0_i32_9 = arith.constant 0 : i32
    %11 = arith.cmpi ne, %10, %c0_i32_9 : i32
    scf.if %11 {
      %c0_10 = arith.constant 0 : index
      %c0_11 = arith.constant 0 : index
      %12 = vector.load %arg9[%c0_10, %c0_11] : memref<8x128xf32, #tpu.memory_space<vmem>>, vector<8x128xf32>
      %c0_12 = arith.constant 0 : index
      %c0_13 = arith.constant 0 : index
      %13 = vector.load %arg5[%c0_12, %c0_13] : memref<8x1xf32, #tpu.memory_space<vmem>>, vector<8x1xf32>
      %14 = vector.broadcast %13 : vector<8x1xf32> to vector<8x128xf32>
      %15 = arith.addf %12, %14 : vector<8x128xf32>
      %16 = tpu.iota {dimensions = array<i32: 1>} : vector<8x128xi32>
      %cst_14 = arith.constant 0.000000e+00 : f32
      %17 = vector.broadcast %cst_14 : f32 to vector<8x128xf32>
      %c0_i32_15 = arith.constant 0 : i32
      %18 = vector.broadcast %c0_i32_15 : i32 to vector<8x128xi32>
      %19 = arith.cmpi sge, %16, %18 : vector<8x128xi32>
      %c64_i32 = arith.constant 64 : i32
      %20 = vector.broadcast %c64_i32 : i32 to vector<8x128xi32>
      %21 = arith.cmpi slt, %16, %20 : vector<8x128xi32>
      %22 = arith.andi %19, %21 : vector<8x128xi1>
      %cst_16 = arith.constant 0.000000e+00 : f32
      %23 = vector.broadcast %cst_16 : f32 to vector<8x128xf32>
      %24 = arith.select %22, %15, %23 : vector<8x128xi1>, vector<8x128xf32>
      %cst_17 = arith.constant dense<0.000000e+00> : vector<8xf32>
      %25 = vector.multi_reduction <add>, %24, %cst_17 [1] : vector<8x128xf32> to vector<8xf32>
      %26 = vector.shape_cast %25 : vector<8xf32> to vector<8x1xf32>
      %cst_18 = arith.constant 1.562500e-02 : f32
      %27 = vector.broadcast %cst_18 : f32 to vector<8x1xf32>
      %28 = arith.mulf %26, %27 : vector<8x1xf32>
      %29 = vector.shape_cast %28 : vector<8x1xf32> to vector<8x1xf32>
      %30 = vector.broadcast %29 : vector<8x1xf32> to vector<8x128xf32>
      %31 = arith.select %22, %30, %17 : vector<8x128xi1>, vector<8x128xf32>
      %c64_i32_19 = arith.constant 64 : i32
      %32 = vector.broadcast %c64_i32_19 : i32 to vector<8x128xi32>
      %33 = arith.cmpi sge, %16, %32 : vector<8x128xi32>
      %c128_i32 = arith.constant 128 : i32
      %34 = vector.broadcast %c128_i32 : i32 to vector<8x128xi32>
      %35 = arith.cmpi slt, %16, %34 : vector<8x128xi32>
      %36 = arith.andi %33, %35 : vector<8x128xi1>
      %cst_20 = arith.constant 0.000000e+00 : f32
      %37 = vector.broadcast %cst_20 : f32 to vector<8x128xf32>
      %38 = arith.select %36, %15, %37 : vector<8x128xi1>, vector<8x128xf32>
      %cst_21 = arith.constant dense<0.000000e+00> : vector<8xf32>
      %39 = vector.multi_reduction <add>, %38, %cst_21 [1] : vector<8x128xf32> to vector<8xf32>
      %40 = vector.shape_cast %39 : vector<8xf32> to vector<8x1xf32>
      %cst_22 = arith.constant 1.562500e-02 : f32
      %41 = vector.broadcast %cst_22 : f32 to vector<8x1xf32>
      %42 = arith.mulf %40, %41 : vector<8x1xf32>
      %43 = vector.shape_cast %42 : vector<8x1xf32> to vector<8x1xf32>
      %44 = vector.broadcast %43 : vector<8x1xf32> to vector<8x128xf32>
      %45 = arith.select %36, %44, %31 : vector<8x128xi1>, vector<8x128xf32>
      %46 = arith.subf %15, %45 : vector<8x128xf32>
      %cst_23 = arith.constant 0.000000e+00 : f32
      %47 = vector.broadcast %cst_23 : f32 to vector<8x128xf32>
      %c0_i32_24 = arith.constant 0 : i32
      %48 = vector.broadcast %c0_i32_24 : i32 to vector<8x128xi32>
      %49 = arith.cmpi sge, %16, %48 : vector<8x128xi32>
      %c64_i32_25 = arith.constant 64 : i32
      %50 = vector.broadcast %c64_i32_25 : i32 to vector<8x128xi32>
      %51 = arith.cmpi slt, %16, %50 : vector<8x128xi32>
      %52 = arith.andi %49, %51 : vector<8x128xi1>
      %53 = arith.mulf %46, %46 : vector<8x128xf32>
      %cst_26 = arith.constant 0.000000e+00 : f32
      %54 = vector.broadcast %cst_26 : f32 to vector<8x128xf32>
      %55 = arith.select %52, %53, %54 : vector<8x128xi1>, vector<8x128xf32>
      %cst_27 = arith.constant dense<0.000000e+00> : vector<8xf32>
      %56 = vector.multi_reduction <add>, %55, %cst_27 [1] : vector<8x128xf32> to vector<8xf32>
      %57 = vector.shape_cast %56 : vector<8xf32> to vector<8x1xf32>
      %cst_28 = arith.constant 1.562500e-02 : f32
      %58 = vector.broadcast %cst_28 : f32 to vector<8x1xf32>
      %59 = arith.mulf %57, %58 : vector<8x1xf32>
      %60 = vector.shape_cast %59 : vector<8x1xf32> to vector<8x1xf32>
      %61 = vector.broadcast %60 : vector<8x1xf32> to vector<8x128xf32>
      %62 = arith.select %52, %61, %47 : vector<8x128xi1>, vector<8x128xf32>
      %c64_i32_29 = arith.constant 64 : i32
      %63 = vector.broadcast %c64_i32_29 : i32 to vector<8x128xi32>
      %64 = arith.cmpi sge, %16, %63 : vector<8x128xi32>
      %c128_i32_30 = arith.constant 128 : i32
      %65 = vector.broadcast %c128_i32_30 : i32 to vector<8x128xi32>
      %66 = arith.cmpi slt, %16, %65 : vector<8x128xi32>
      %67 = arith.andi %64, %66 : vector<8x128xi1>
      %68 = arith.mulf %46, %46 : vector<8x128xf32>
      %cst_31 = arith.constant 0.000000e+00 : f32
      %69 = vector.broadcast %cst_31 : f32 to vector<8x128xf32>
      %70 = arith.select %67, %68, %69 : vector<8x128xi1>, vector<8x128xf32>
      %cst_32 = arith.constant dense<0.000000e+00> : vector<8xf32>
      %71 = vector.multi_reduction <add>, %70, %cst_32 [1] : vector<8x128xf32> to vector<8xf32>
      %72 = vector.shape_cast %71 : vector<8xf32> to vector<8x1xf32>
      %cst_33 = arith.constant 1.562500e-02 : f32
      %73 = vector.broadcast %cst_33 : f32 to vector<8x1xf32>
      %74 = arith.mulf %72, %73 : vector<8x1xf32>
      %75 = vector.shape_cast %74 : vector<8x1xf32> to vector<8x1xf32>
      %76 = vector.broadcast %75 : vector<8x1xf32> to vector<8x128xf32>
      %77 = arith.select %67, %76, %62 : vector<8x128xi1>, vector<8x128xf32>
      %cst_34 = arith.constant 9.99999974E-6 : f32
      %78 = vector.broadcast %cst_34 : f32 to vector<8x128xf32>
      %79 = arith.addf %77, %78 : vector<8x128xf32>
      %80 = math.rsqrt %79 : vector<8x128xf32>
      %81 = arith.mulf %46, %80 : vector<8x128xf32>
      %c0_35 = arith.constant 0 : index
      %c0_36 = arith.constant 0 : index
      %82 = vector.load %arg6[%c0_35, %c0_36] : memref<8x1xf32, #tpu.memory_space<vmem>>, vector<8x1xf32>
      %83 = vector.broadcast %82 : vector<8x1xf32> to vector<8x128xf32>
      %84 = arith.mulf %81, %83 : vector<8x128xf32>
      %c0_37 = arith.constant 0 : index
      %c0_38 = arith.constant 0 : index
      %85 = vector.load %arg7[%c0_37, %c0_38] : memref<8x1xf32, #tpu.memory_space<vmem>>, vector<8x1xf32>
      %86 = vector.broadcast %85 : vector<8x1xf32> to vector<8x128xf32>
      %87 = arith.addf %84, %86 : vector<8x128xf32>
      %cst_39 = arith.constant 0.000000e+00 : f32
      %88 = vector.broadcast %cst_39 : f32 to vector<8x128xf32>
      %89 = arith.cmpf oge, %87, %88 : vector<8x128xf32>
      %cst_40 = arith.constant 0.00999999977 : f32
      %90 = vector.broadcast %cst_40 : f32 to vector<8x128xf32>
      %91 = arith.mulf %90, %87 : vector<8x128xf32>
      %92 = arith.select %89, %87, %91 : vector<8x128xi1>, vector<8x128xf32>
      %93 = arith.truncf %92 : vector<8x128xf32> to vector<8x128xbf16>
      %c0_41 = arith.constant 0 : index
      %c0_42 = arith.constant 0 : index
      %94 = vector.load %arg8[%c0_41, %c0_42] : memref<8x128xbf16, #tpu.memory_space<vmem>>, vector<8x128xbf16>
      tpu.vector_store %arg8[%c0_41, %c0_42], %93 {strides = array<i32>} : memref<8x128xbf16, #tpu.memory_space<vmem>>, vector<8x128xbf16>,
    } else {
    }
    return
  }
  func.func @transform_0(%arg0: i32, %arg1: i32, %arg2: i32) -> (i32, i32) {
    %c0_i32 = arith.constant 0 : i32
    return %arg0, %arg2 : i32, i32
  }
  func.func @transform_1(%arg0: i32, %arg1: i32, %arg2: i32) -> (i32, i32) {
    %c0_i32 = arith.constant 0 : i32
    return %arg2, %arg1 : i32, i32
  }
  func.func @transform_2(%arg0: i32, %arg1: i32, %arg2: i32) -> (i32, i32) {
    %c0_i32 = arith.constant 0 : i32
    %c0_i32_0 = arith.constant 0 : i32
    return %arg0, %c0_i32 : i32, i32
  }
  func.func @transform_3(%arg0: i32, %arg1: i32, %arg2: i32) -> (i32, i32) {
    %c0_i32 = arith.constant 0 : i32
    %c0_i32_0 = arith.constant 0 : i32
    return %arg0, %c0_i32 : i32, i32
  }
  func.func @transform_4(%arg0: i32, %arg1: i32, %arg2: i32) -> (i32, i32) {
    %c0_i32 = arith.constant 0 : i32
    %c0_i32_0 = arith.constant 0 : i32
    return %arg0, %c0_i32 : i32, i32
  }
  func.func @transform_5(%arg0: i32, %arg1: i32, %arg2: i32) -> (i32, i32) {
    %c0_i32 = arith.constant 0 : i32
    return %arg0, %arg1 : i32, i32
  }
}

module attributes {stable_mosaic.version = 11 : i64} {
  func.func @_conv_fused_kernel(%arg0: i32, %arg1: i32, %arg2: i32, %arg3: memref<8x72xbf16, #tpu.memory_space<vmem>>, %arg4: memref<72x32xbf16, #tpu.memory_space<vmem>>, %arg5: memref<8x1xf32, #tpu.memory_space<vmem>>, %arg6: memref<8x1xf32, #tpu.memory_space<vmem>>, %arg7: memref<8x1xf32, #tpu.memory_space<vmem>>, %arg8: memref<8x32xbf16, #tpu.memory_space<vmem>>, %arg9: memref<8x32xf32, #tpu.memory_space<vmem>>) attributes {dimension_semantics = [#tpu.dimension_semantics<parallel>, #tpu.dimension_semantics<parallel>, #tpu.dimension_semantics<arbitrary>], iteration_bounds = array<i64: 2, 1, 1>, scalar_prefetch = 0 : i64, scratch_operands = 1 : i64, tpu.core_type = #tpu.core_type<tc>, window_params = [{transform_indices = @transform_0, window_bounds = array<i64: 8, 72>}, {transform_indices = @transform_1, window_bounds = array<i64: 72, 32>}, {transform_indices = @transform_2, window_bounds = array<i64: 8, 1>}, {transform_indices = @transform_3, window_bounds = array<i64: 8, 1>}, {transform_indices = @transform_4, window_bounds = array<i64: 8, 1>}, {transform_indices = @transform_5, window_bounds = array<i64: 8, 32>}]} {
    %c0_i32 = arith.constant 0 : i32
    %0 = arith.cmpi eq, %arg2, %c0_i32 : i32
    %1 = arith.extui %0 : i1 to i32
    %c0_i32_0 = arith.constant 0 : i32
    %2 = arith.cmpi ne, %1, %c0_i32_0 : i32
    scf.if %2 {
      %cst_10 = arith.constant 0.000000e+00 : f32
      %12 = vector.broadcast %cst_10 : f32 to vector<8x32xf32>
      %c0_11 = arith.constant 0 : index
      %c0_12 = arith.constant 0 : index
      %13 = vector.load %arg9[%c0_11, %c0_12] : memref<8x32xf32, #tpu.memory_space<vmem>>, vector<8x32xf32>
      tpu.vector_store %arg9[%c0_11, %c0_12], %12 {strides = array<i32>} : memref<8x32xf32, #tpu.memory_space<vmem>>, vector<8x32xf32>,
    } else {
    }
    %c0 = arith.constant 0 : index
    %c0_1 = arith.constant 0 : index
    %3 = vector.load %arg3[%c0, %c0_1] : memref<8x72xbf16, #tpu.memory_space<vmem>>, vector<8x72xbf16>
    %c0_2 = arith.constant 0 : index
    %c0_3 = arith.constant 0 : index
    %4 = vector.load %arg4[%c0_2, %c0_3] : memref<72x32xbf16, #tpu.memory_space<vmem>>, vector<72x32xbf16>
    %cst = arith.constant dense<0.000000e+00> : vector<8x32xf32>
    %5 = tpu.matmul %3, %4, %cst {dimension_numbers = #tpu.dot_dimension_numbers<[1], [0], [0], [1], [0, 0, 1, 1], [], []>} : vector<8x72xbf16>, vector<72x32xbf16>, vector<8x32xf32> -> vector<8x32xf32>
    %c0_4 = arith.constant 0 : index
    %c0_5 = arith.constant 0 : index
    %6 = vector.load %arg9[%c0_4, %c0_5] : memref<8x32xf32, #tpu.memory_space<vmem>>, vector<8x32xf32>
    %7 = arith.addf %6, %5 : vector<8x32xf32>
    %c0_6 = arith.constant 0 : index
    %c0_7 = arith.constant 0 : index
    %8 = vector.load %arg9[%c0_6, %c0_7] : memref<8x32xf32, #tpu.memory_space<vmem>>, vector<8x32xf32>
    tpu.vector_store %arg9[%c0_6, %c0_7], %7 {strides = array<i32>} : memref<8x32xf32, #tpu.memory_space<vmem>>, vector<8x32xf32>,
    %c0_i32_8 = arith.constant 0 : i32
    %9 = arith.cmpi eq, %arg2, %c0_i32_8 : i32
    %10 = arith.extui %9 : i1 to i32
    %c0_i32_9 = arith.constant 0 : i32
    %11 = arith.cmpi ne, %10, %c0_i32_9 : i32
    scf.if %11 {
      %c0_10 = arith.constant 0 : index
      %c0_11 = arith.constant 0 : index
      %12 = vector.load %arg9[%c0_10, %c0_11] : memref<8x32xf32, #tpu.memory_space<vmem>>, vector<8x32xf32>
      %c0_12 = arith.constant 0 : index
      %c0_13 = arith.constant 0 : index
      %13 = vector.load %arg5[%c0_12, %c0_13] : memref<8x1xf32, #tpu.memory_space<vmem>>, vector<8x1xf32>
      %14 = vector.broadcast %13 : vector<8x1xf32> to vector<8x32xf32>
      %15 = arith.addf %12, %14 : vector<8x32xf32>
      %16 = tpu.iota {dimensions = array<i32: 1>} : vector<8x32xi32>
      %cst_14 = arith.constant 0.000000e+00 : f32
      %17 = vector.broadcast %cst_14 : f32 to vector<8x32xf32>
      %c0_i32_15 = arith.constant 0 : i32
      %18 = vector.broadcast %c0_i32_15 : i32 to vector<8x32xi32>
      %19 = arith.cmpi sge, %16, %18 : vector<8x32xi32>
      %c16_i32 = arith.constant 16 : i32
      %20 = vector.broadcast %c16_i32 : i32 to vector<8x32xi32>
      %21 = arith.cmpi slt, %16, %20 : vector<8x32xi32>
      %22 = arith.andi %19, %21 : vector<8x32xi1>
      %cst_16 = arith.constant 0.000000e+00 : f32
      %23 = vector.broadcast %cst_16 : f32 to vector<8x32xf32>
      %24 = arith.select %22, %15, %23 : vector<8x32xi1>, vector<8x32xf32>
      %cst_17 = arith.constant dense<0.000000e+00> : vector<8xf32>
      %25 = vector.multi_reduction <add>, %24, %cst_17 [1] : vector<8x32xf32> to vector<8xf32>
      %26 = vector.shape_cast %25 : vector<8xf32> to vector<8x1xf32>
      %cst_18 = arith.constant 6.250000e-02 : f32
      %27 = vector.broadcast %cst_18 : f32 to vector<8x1xf32>
      %28 = arith.mulf %26, %27 : vector<8x1xf32>
      %29 = vector.shape_cast %28 : vector<8x1xf32> to vector<8x1xf32>
      %30 = vector.broadcast %29 : vector<8x1xf32> to vector<8x32xf32>
      %31 = arith.select %22, %30, %17 : vector<8x32xi1>, vector<8x32xf32>
      %c16_i32_19 = arith.constant 16 : i32
      %32 = vector.broadcast %c16_i32_19 : i32 to vector<8x32xi32>
      %33 = arith.cmpi sge, %16, %32 : vector<8x32xi32>
      %c32_i32 = arith.constant 32 : i32
      %34 = vector.broadcast %c32_i32 : i32 to vector<8x32xi32>
      %35 = arith.cmpi slt, %16, %34 : vector<8x32xi32>
      %36 = arith.andi %33, %35 : vector<8x32xi1>
      %cst_20 = arith.constant 0.000000e+00 : f32
      %37 = vector.broadcast %cst_20 : f32 to vector<8x32xf32>
      %38 = arith.select %36, %15, %37 : vector<8x32xi1>, vector<8x32xf32>
      %cst_21 = arith.constant dense<0.000000e+00> : vector<8xf32>
      %39 = vector.multi_reduction <add>, %38, %cst_21 [1] : vector<8x32xf32> to vector<8xf32>
      %40 = vector.shape_cast %39 : vector<8xf32> to vector<8x1xf32>
      %cst_22 = arith.constant 6.250000e-02 : f32
      %41 = vector.broadcast %cst_22 : f32 to vector<8x1xf32>
      %42 = arith.mulf %40, %41 : vector<8x1xf32>
      %43 = vector.shape_cast %42 : vector<8x1xf32> to vector<8x1xf32>
      %44 = vector.broadcast %43 : vector<8x1xf32> to vector<8x32xf32>
      %45 = arith.select %36, %44, %31 : vector<8x32xi1>, vector<8x32xf32>
      %46 = arith.subf %15, %45 : vector<8x32xf32>
      %cst_23 = arith.constant 0.000000e+00 : f32
      %47 = vector.broadcast %cst_23 : f32 to vector<8x32xf32>
      %c0_i32_24 = arith.constant 0 : i32
      %48 = vector.broadcast %c0_i32_24 : i32 to vector<8x32xi32>
      %49 = arith.cmpi sge, %16, %48 : vector<8x32xi32>
      %c16_i32_25 = arith.constant 16 : i32
      %50 = vector.broadcast %c16_i32_25 : i32 to vector<8x32xi32>
      %51 = arith.cmpi slt, %16, %50 : vector<8x32xi32>
      %52 = arith.andi %49, %51 : vector<8x32xi1>
      %53 = arith.mulf %46, %46 : vector<8x32xf32>
      %cst_26 = arith.constant 0.000000e+00 : f32
      %54 = vector.broadcast %cst_26 : f32 to vector<8x32xf32>
      %55 = arith.select %52, %53, %54 : vector<8x32xi1>, vector<8x32xf32>
      %cst_27 = arith.constant dense<0.000000e+00> : vector<8xf32>
      %56 = vector.multi_reduction <add>, %55, %cst_27 [1] : vector<8x32xf32> to vector<8xf32>
      %57 = vector.shape_cast %56 : vector<8xf32> to vector<8x1xf32>
      %cst_28 = arith.constant 6.250000e-02 : f32
      %58 = vector.broadcast %cst_28 : f32 to vector<8x1xf32>
      %59 = arith.mulf %57, %58 : vector<8x1xf32>
      %60 = vector.shape_cast %59 : vector<8x1xf32> to vector<8x1xf32>
      %61 = vector.broadcast %60 : vector<8x1xf32> to vector<8x32xf32>
      %62 = arith.select %52, %61, %47 : vector<8x32xi1>, vector<8x32xf32>
      %c16_i32_29 = arith.constant 16 : i32
      %63 = vector.broadcast %c16_i32_29 : i32 to vector<8x32xi32>
      %64 = arith.cmpi sge, %16, %63 : vector<8x32xi32>
      %c32_i32_30 = arith.constant 32 : i32
      %65 = vector.broadcast %c32_i32_30 : i32 to vector<8x32xi32>
      %66 = arith.cmpi slt, %16, %65 : vector<8x32xi32>
      %67 = arith.andi %64, %66 : vector<8x32xi1>
      %68 = arith.mulf %46, %46 : vector<8x32xf32>
      %cst_31 = arith.constant 0.000000e+00 : f32
      %69 = vector.broadcast %cst_31 : f32 to vector<8x32xf32>
      %70 = arith.select %67, %68, %69 : vector<8x32xi1>, vector<8x32xf32>
      %cst_32 = arith.constant dense<0.000000e+00> : vector<8xf32>
      %71 = vector.multi_reduction <add>, %70, %cst_32 [1] : vector<8x32xf32> to vector<8xf32>
      %72 = vector.shape_cast %71 : vector<8xf32> to vector<8x1xf32>
      %cst_33 = arith.constant 6.250000e-02 : f32
      %73 = vector.broadcast %cst_33 : f32 to vector<8x1xf32>
      %74 = arith.mulf %72, %73 : vector<8x1xf32>
      %75 = vector.shape_cast %74 : vector<8x1xf32> to vector<8x1xf32>
      %76 = vector.broadcast %75 : vector<8x1xf32> to vector<8x32xf32>
      %77 = arith.select %67, %76, %62 : vector<8x32xi1>, vector<8x32xf32>
      %cst_34 = arith.constant 9.99999974E-6 : f32
      %78 = vector.broadcast %cst_34 : f32 to vector<8x32xf32>
      %79 = arith.addf %77, %78 : vector<8x32xf32>
      %80 = math.rsqrt %79 : vector<8x32xf32>
      %81 = arith.mulf %46, %80 : vector<8x32xf32>
      %c0_35 = arith.constant 0 : index
      %c0_36 = arith.constant 0 : index
      %82 = vector.load %arg6[%c0_35, %c0_36] : memref<8x1xf32, #tpu.memory_space<vmem>>, vector<8x1xf32>
      %83 = vector.broadcast %82 : vector<8x1xf32> to vector<8x32xf32>
      %84 = arith.mulf %81, %83 : vector<8x32xf32>
      %c0_37 = arith.constant 0 : index
      %c0_38 = arith.constant 0 : index
      %85 = vector.load %arg7[%c0_37, %c0_38] : memref<8x1xf32, #tpu.memory_space<vmem>>, vector<8x1xf32>
      %86 = vector.broadcast %85 : vector<8x1xf32> to vector<8x32xf32>
      %87 = arith.addf %84, %86 : vector<8x32xf32>
      %cst_39 = arith.constant 0.000000e+00 : f32
      %88 = vector.broadcast %cst_39 : f32 to vector<8x32xf32>
      %89 = arith.cmpf oge, %87, %88 : vector<8x32xf32>
      %cst_40 = arith.constant 0.00999999977 : f32
      %90 = vector.broadcast %cst_40 : f32 to vector<8x32xf32>
      %91 = arith.mulf %90, %87 : vector<8x32xf32>
      %92 = arith.select %89, %87, %91 : vector<8x32xi1>, vector<8x32xf32>
      %93 = arith.truncf %92 : vector<8x32xf32> to vector<8x32xbf16>
      %c0_41 = arith.constant 0 : index
      %c0_42 = arith.constant 0 : index
      %94 = vector.load %arg8[%c0_41, %c0_42] : memref<8x32xbf16, #tpu.memory_space<vmem>>, vector<8x32xbf16>
      tpu.vector_store %arg8[%c0_41, %c0_42], %93 {strides = array<i32>} : memref<8x32xbf16, #tpu.memory_space<vmem>>, vector<8x32xbf16>,
    } else {
    }
    return
  }
  func.func @transform_0(%arg0: i32, %arg1: i32, %arg2: i32) -> (i32, i32) {
    %c0_i32 = arith.constant 0 : i32
    return %arg0, %arg2 : i32, i32
  }
  func.func @transform_1(%arg0: i32, %arg1: i32, %arg2: i32) -> (i32, i32) {
    %c0_i32 = arith.constant 0 : i32
    return %arg2, %arg1 : i32, i32
  }
  func.func @transform_2(%arg0: i32, %arg1: i32, %arg2: i32) -> (i32, i32) {
    %c0_i32 = arith.constant 0 : i32
    %c0_i32_0 = arith.constant 0 : i32
    return %arg0, %c0_i32 : i32, i32
  }
  func.func @transform_3(%arg0: i32, %arg1: i32, %arg2: i32) -> (i32, i32) {
    %c0_i32 = arith.constant 0 : i32
    %c0_i32_0 = arith.constant 0 : i32
    return %arg0, %c0_i32 : i32, i32
  }
  func.func @transform_4(%arg0: i32, %arg1: i32, %arg2: i32) -> (i32, i32) {
    %c0_i32 = arith.constant 0 : i32
    %c0_i32_0 = arith.constant 0 : i32
    return %arg0, %c0_i32 : i32, i32
  }
  func.func @transform_5(%arg0: i32, %arg1: i32, %arg2: i32) -> (i32, i32) {
    %c0_i32 = arith.constant 0 : i32
    return %arg0, %arg1 : i32, i32
  }
}

module attributes {stable_mosaic.version = 11 : i64} {
  func.func @_conv_fused_kernel(%arg0: i32, %arg1: i32, %arg2: i32, %arg3: memref<16x16xbf16, #tpu.memory_space<vmem>>, %arg4: memref<16x32xbf16, #tpu.memory_space<vmem>>, %arg5: memref<16x1xf32, #tpu.memory_space<vmem>>, %arg6: memref<16x32xbf16, #tpu.memory_space<vmem>>, %arg7: memref<16x32xf32, #tpu.memory_space<vmem>>) attributes {dimension_semantics = [#tpu.dimension_semantics<parallel>, #tpu.dimension_semantics<parallel>, #tpu.dimension_semantics<arbitrary>], iteration_bounds = array<i64: 2, 1, 1>, scalar_prefetch = 0 : i64, scratch_operands = 1 : i64, tpu.core_type = #tpu.core_type<tc>, window_params = [{transform_indices = @transform_0, window_bounds = array<i64: 16, 16>}, {transform_indices = @transform_1, window_bounds = array<i64: 16, 32>}, {transform_indices = @transform_2, window_bounds = array<i64: 16, 1>}, {transform_indices = @transform_3, window_bounds = array<i64: 16, 32>}]} {
    %c0_i32 = arith.constant 0 : i32
    %0 = arith.cmpi eq, %arg2, %c0_i32 : i32
    %1 = arith.extui %0 : i1 to i32
    %c0_i32_0 = arith.constant 0 : i32
    %2 = arith.cmpi ne, %1, %c0_i32_0 : i32
    scf.if %2 {
      %cst_10 = arith.constant 0.000000e+00 : f32
      %12 = vector.broadcast %cst_10 : f32 to vector<16x32xf32>
      %c0_11 = arith.constant 0 : index
      %c0_12 = arith.constant 0 : index
      %13 = vector.load %arg7[%c0_11, %c0_12] : memref<16x32xf32, #tpu.memory_space<vmem>>, vector<16x32xf32>
      tpu.vector_store %arg7[%c0_11, %c0_12], %12 {strides = array<i32>} : memref<16x32xf32, #tpu.memory_space<vmem>>, vector<16x32xf32>,
    } else {
    }
    %c0 = arith.constant 0 : index
    %c0_1 = arith.constant 0 : index
    %3 = vector.load %arg3[%c0, %c0_1] : memref<16x16xbf16, #tpu.memory_space<vmem>>, vector<16x16xbf16>
    %c0_2 = arith.constant 0 : index
    %c0_3 = arith.constant 0 : index
    %4 = vector.load %arg4[%c0_2, %c0_3] : memref<16x32xbf16, #tpu.memory_space<vmem>>, vector<16x32xbf16>
    %cst = arith.constant dense<0.000000e+00> : vector<16x32xf32>
    %5 = tpu.matmul %3, %4, %cst {dimension_numbers = #tpu.dot_dimension_numbers<[1], [0], [0], [1], [0, 0, 1, 1], [], []>} : vector<16x16xbf16>, vector<16x32xbf16>, vector<16x32xf32> -> vector<16x32xf32>
    %c0_4 = arith.constant 0 : index
    %c0_5 = arith.constant 0 : index
    %6 = vector.load %arg7[%c0_4, %c0_5] : memref<16x32xf32, #tpu.memory_space<vmem>>, vector<16x32xf32>
    %7 = arith.addf %6, %5 : vector<16x32xf32>
    %c0_6 = arith.constant 0 : index
    %c0_7 = arith.constant 0 : index
    %8 = vector.load %arg7[%c0_6, %c0_7] : memref<16x32xf32, #tpu.memory_space<vmem>>, vector<16x32xf32>
    tpu.vector_store %arg7[%c0_6, %c0_7], %7 {strides = array<i32>} : memref<16x32xf32, #tpu.memory_space<vmem>>, vector<16x32xf32>,
    %c0_i32_8 = arith.constant 0 : i32
    %9 = arith.cmpi eq, %arg2, %c0_i32_8 : i32
    %10 = arith.extui %9 : i1 to i32
    %c0_i32_9 = arith.constant 0 : i32
    %11 = arith.cmpi ne, %10, %c0_i32_9 : i32
    scf.if %11 {
      %c0_10 = arith.constant 0 : index
      %c0_11 = arith.constant 0 : index
      %12 = vector.load %arg7[%c0_10, %c0_11] : memref<16x32xf32, #tpu.memory_space<vmem>>, vector<16x32xf32>
      %c0_12 = arith.constant 0 : index
      %c0_13 = arith.constant 0 : index
      %13 = vector.load %arg5[%c0_12, %c0_13] : memref<16x1xf32, #tpu.memory_space<vmem>>, vector<16x1xf32>
      %14 = vector.broadcast %13 : vector<16x1xf32> to vector<16x32xf32>
      %15 = arith.addf %12, %14 : vector<16x32xf32>
      %16 = arith.truncf %15 : vector<16x32xf32> to vector<16x32xbf16>
      %c0_14 = arith.constant 0 : index
      %c0_15 = arith.constant 0 : index
      %17 = vector.load %arg6[%c0_14, %c0_15] : memref<16x32xbf16, #tpu.memory_space<vmem>>, vector<16x32xbf16>
      tpu.vector_store %arg6[%c0_14, %c0_15], %16 {strides = array<i32>} : memref<16x32xbf16, #tpu.memory_space<vmem>>, vector<16x32xbf16>,
    } else {
    }
    return
  }
  func.func @transform_0(%arg0: i32, %arg1: i32, %arg2: i32) -> (i32, i32) {
    %c0_i32 = arith.constant 0 : i32
    return %arg0, %arg2 : i32, i32
  }
  func.func @transform_1(%arg0: i32, %arg1: i32, %arg2: i32) -> (i32, i32) {
    %c0_i32 = arith.constant 0 : i32
    return %arg2, %arg1 : i32, i32
  }
  func.func @transform_2(%arg0: i32, %arg1: i32, %arg2: i32) -> (i32, i32) {
    %c0_i32 = arith.constant 0 : i32
    %c0_i32_0 = arith.constant 0 : i32
    return %arg0, %c0_i32 : i32, i32
  }
  func.func @transform_3(%arg0: i32, %arg1: i32, %arg2: i32) -> (i32, i32) {
    %c0_i32 = arith.constant 0 : i32
    return %arg0, %arg1 : i32, i32
  }
}

module attributes {stable_mosaic.version = 11 : i64} {
  func.func @_conv_fused_kernel(%arg0: i32, %arg1: i32, %arg2: i32, %arg3: memref<8x72xbf16, #tpu.memory_space<vmem>>, %arg4: memref<72x128xbf16, #tpu.memory_space<vmem>>, %arg5: memref<8x72xbf16, #tpu.memory_space<vmem>>, %arg6: memref<72x128xbf16, #tpu.memory_space<vmem>>, %arg7: memref<8x1xf32, #tpu.memory_space<vmem>>, %arg8: memref<8x1xf32, #tpu.memory_space<vmem>>, %arg9: memref<8x1xf32, #tpu.memory_space<vmem>>, %arg10: memref<8x128xf32, #tpu.memory_space<vmem>>) attributes {dimension_semantics = [#tpu.dimension_semantics<parallel>, #tpu.dimension_semantics<parallel>, #tpu.dimension_semantics<arbitrary>], iteration_bounds = array<i64: 1, 1, 1>, scalar_prefetch = 0 : i64, scratch_operands = 0 : i64, tpu.core_type = #tpu.core_type<tc>, window_params = [{transform_indices = @transform_0, window_bounds = array<i64: 8, 72>}, {transform_indices = @transform_1, window_bounds = array<i64: 72, 128>}, {transform_indices = @transform_2, window_bounds = array<i64: 8, 72>}, {transform_indices = @transform_3, window_bounds = array<i64: 72, 128>}, {transform_indices = @transform_4, window_bounds = array<i64: 8, 1>}, {transform_indices = @transform_5, window_bounds = array<i64: 8, 1>}, {transform_indices = @transform_6, window_bounds = array<i64: 8, 1>}, {transform_indices = @transform_7, window_bounds = array<i64: 8, 128>}]} {
    %c0_i32 = arith.constant 0 : i32
    %0 = arith.cmpi eq, %arg2, %c0_i32 : i32
    %1 = arith.extui %0 : i1 to i32
    %c0_i32_0 = arith.constant 0 : i32
    %2 = arith.cmpi ne, %1, %c0_i32_0 : i32
    scf.if %2 {
      %cst_15 = arith.constant 0.000000e+00 : f32
      %16 = vector.broadcast %cst_15 : f32 to vector<8x128xf32>
      %c0_16 = arith.constant 0 : index
      %c0_17 = arith.constant 0 : index
      %17 = vector.load %arg10[%c0_16, %c0_17] : memref<8x128xf32, #tpu.memory_space<vmem>>, vector<8x128xf32>
      tpu.vector_store %arg10[%c0_16, %c0_17], %16 {strides = array<i32>} : memref<8x128xf32, #tpu.memory_space<vmem>>, vector<8x128xf32>,
    } else {
    }
    %c0 = arith.constant 0 : index
    %c0_1 = arith.constant 0 : index
    %3 = vector.load %arg3[%c0, %c0_1] : memref<8x72xbf16, #tpu.memory_space<vmem>>, vector<8x72xbf16>
    %c0_2 = arith.constant 0 : index
    %c0_3 = arith.constant 0 : index
    %4 = vector.load %arg4[%c0_2, %c0_3] : memref<72x128xbf16, #tpu.memory_space<vmem>>, vector<72x128xbf16>
    %cst = arith.constant dense<0.000000e+00> : vector<8x128xf32>
    %5 = tpu.matmul %3, %4, %cst {dimension_numbers = #tpu.dot_dimension_numbers<[1], [0], [0], [1], [0, 0, 1, 1], [], []>} : vector<8x72xbf16>, vector<72x128xbf16>, vector<8x128xf32> -> vector<8x128xf32>
    %c0_4 = arith.constant 0 : index
    %c0_5 = arith.constant 0 : index
    %6 = vector.load %arg5[%c0_4, %c0_5] : memref<8x72xbf16, #tpu.memory_space<vmem>>, vector<8x72xbf16>
    %c0_6 = arith.constant 0 : index
    %c0_7 = arith.constant 0 : index
    %7 = vector.load %arg6[%c0_6, %c0_7] : memref<72x128xbf16, #tpu.memory_space<vmem>>, vector<72x128xbf16>
    %cst_8 = arith.constant dense<0.000000e+00> : vector<8x128xf32>
    %8 = tpu.matmul %6, %7, %cst_8 {dimension_numbers = #tpu.dot_dimension_numbers<[1], [0], [0], [1], [0, 0, 1, 1], [], []>} : vector<8x72xbf16>, vector<72x128xbf16>, vector<8x128xf32> -> vector<8x128xf32>
    %9 = arith.addf %5, %8 : vector<8x128xf32>
    %c0_9 = arith.constant 0 : index
    %c0_10 = arith.constant 0 : index
    %10 = vector.load %arg10[%c0_9, %c0_10] : memref<8x128xf32, #tpu.memory_space<vmem>>, vector<8x128xf32>
    %11 = arith.addf %10, %9 : vector<8x128xf32>
    %c0_11 = arith.constant 0 : index
    %c0_12 = arith.constant 0 : index
    %12 = vector.load %arg10[%c0_11, %c0_12] : memref<8x128xf32, #tpu.memory_space<vmem>>, vector<8x128xf32>
    tpu.vector_store %arg10[%c0_11, %c0_12], %11 {strides = array<i32>} : memref<8x128xf32, #tpu.memory_space<vmem>>, vector<8x128xf32>,
    %c0_i32_13 = arith.constant 0 : i32
    %13 = arith.cmpi eq, %arg2, %c0_i32_13 : i32
    %14 = arith.extui %13 : i1 to i32
    %c0_i32_14 = arith.constant 0 : i32
    %15 = arith.cmpi ne, %14, %c0_i32_14 : i32
    scf.if %15 {
      %c0_15 = arith.constant 0 : index
      %c0_16 = arith.constant 0 : index
      %16 = vector.load %arg10[%c0_15, %c0_16] : memref<8x128xf32, #tpu.memory_space<vmem>>, vector<8x128xf32>
      %c0_17 = arith.constant 0 : index
      %c0_18 = arith.constant 0 : index
      %17 = vector.load %arg7[%c0_17, %c0_18] : memref<8x1xf32, #tpu.memory_space<vmem>>, vector<8x1xf32>
      %18 = vector.broadcast %17 : vector<8x1xf32> to vector<8x128xf32>
      %19 = arith.addf %16, %18 : vector<8x128xf32>
      %20 = tpu.iota {dimensions = array<i32: 1>} : vector<8x128xi32>
      %cst_19 = arith.constant 0.000000e+00 : f32
      %21 = vector.broadcast %cst_19 : f32 to vector<8x128xf32>
      %c0_i32_20 = arith.constant 0 : i32
      %22 = vector.broadcast %c0_i32_20 : i32 to vector<8x128xi32>
      %23 = arith.cmpi sge, %20, %22 : vector<8x128xi32>
      %c64_i32 = arith.constant 64 : i32
      %24 = vector.broadcast %c64_i32 : i32 to vector<8x128xi32>
      %25 = arith.cmpi slt, %20, %24 : vector<8x128xi32>
      %26 = arith.andi %23, %25 : vector<8x128xi1>
      %cst_21 = arith.constant 0.000000e+00 : f32
      %27 = vector.broadcast %cst_21 : f32 to vector<8x128xf32>
      %28 = arith.select %26, %19, %27 : vector<8x128xi1>, vector<8x128xf32>
      %cst_22 = arith.constant dense<0.000000e+00> : vector<8xf32>
      %29 = vector.multi_reduction <add>, %28, %cst_22 [1] : vector<8x128xf32> to vector<8xf32>
      %30 = vector.shape_cast %29 : vector<8xf32> to vector<8x1xf32>
      %cst_23 = arith.constant 1.562500e-02 : f32
      %31 = vector.broadcast %cst_23 : f32 to vector<8x1xf32>
      %32 = arith.mulf %30, %31 : vector<8x1xf32>
      %33 = vector.shape_cast %32 : vector<8x1xf32> to vector<8x1xf32>
      %34 = vector.broadcast %33 : vector<8x1xf32> to vector<8x128xf32>
      %35 = arith.select %26, %34, %21 : vector<8x128xi1>, vector<8x128xf32>
      %c64_i32_24 = arith.constant 64 : i32
      %36 = vector.broadcast %c64_i32_24 : i32 to vector<8x128xi32>
      %37 = arith.cmpi sge, %20, %36 : vector<8x128xi32>
      %c128_i32 = arith.constant 128 : i32
      %38 = vector.broadcast %c128_i32 : i32 to vector<8x128xi32>
      %39 = arith.cmpi slt, %20, %38 : vector<8x128xi32>
      %40 = arith.andi %37, %39 : vector<8x128xi1>
      %cst_25 = arith.constant 0.000000e+00 : f32
      %41 = vector.broadcast %cst_25 : f32 to vector<8x128xf32>
      %42 = arith.select %40, %19, %41 : vector<8x128xi1>, vector<8x128xf32>
      %cst_26 = arith.constant dense<0.000000e+00> : vector<8xf32>
      %43 = vector.multi_reduction <add>, %42, %cst_26 [1] : vector<8x128xf32> to vector<8xf32>
      %44 = vector.shape_cast %43 : vector<8xf32> to vector<8x1xf32>
      %cst_27 = arith.constant 1.562500e-02 : f32
      %45 = vector.broadcast %cst_27 : f32 to vector<8x1xf32>
      %46 = arith.mulf %44, %45 : vector<8x1xf32>
      %47 = vector.shape_cast %46 : vector<8x1xf32> to vector<8x1xf32>
      %48 = vector.broadcast %47 : vector<8x1xf32> to vector<8x128xf32>
      %49 = arith.select %40, %48, %35 : vector<8x128xi1>, vector<8x128xf32>
      %50 = arith.subf %19, %49 : vector<8x128xf32>
      %cst_28 = arith.constant 0.000000e+00 : f32
      %51 = vector.broadcast %cst_28 : f32 to vector<8x128xf32>
      %c0_i32_29 = arith.constant 0 : i32
      %52 = vector.broadcast %c0_i32_29 : i32 to vector<8x128xi32>
      %53 = arith.cmpi sge, %20, %52 : vector<8x128xi32>
      %c64_i32_30 = arith.constant 64 : i32
      %54 = vector.broadcast %c64_i32_30 : i32 to vector<8x128xi32>
      %55 = arith.cmpi slt, %20, %54 : vector<8x128xi32>
      %56 = arith.andi %53, %55 : vector<8x128xi1>
      %57 = arith.mulf %50, %50 : vector<8x128xf32>
      %cst_31 = arith.constant 0.000000e+00 : f32
      %58 = vector.broadcast %cst_31 : f32 to vector<8x128xf32>
      %59 = arith.select %56, %57, %58 : vector<8x128xi1>, vector<8x128xf32>
      %cst_32 = arith.constant dense<0.000000e+00> : vector<8xf32>
      %60 = vector.multi_reduction <add>, %59, %cst_32 [1] : vector<8x128xf32> to vector<8xf32>
      %61 = vector.shape_cast %60 : vector<8xf32> to vector<8x1xf32>
      %cst_33 = arith.constant 1.562500e-02 : f32
      %62 = vector.broadcast %cst_33 : f32 to vector<8x1xf32>
      %63 = arith.mulf %61, %62 : vector<8x1xf32>
      %64 = vector.shape_cast %63 : vector<8x1xf32> to vector<8x1xf32>
      %65 = vector.broadcast %64 : vector<8x1xf32> to vector<8x128xf32>
      %66 = arith.select %56, %65, %51 : vector<8x128xi1>, vector<8x128xf32>
      %c64_i32_34 = arith.constant 64 : i32
      %67 = vector.broadcast %c64_i32_34 : i32 to vector<8x128xi32>
      %68 = arith.cmpi sge, %20, %67 : vector<8x128xi32>
      %c128_i32_35 = arith.constant 128 : i32
      %69 = vector.broadcast %c128_i32_35 : i32 to vector<8x128xi32>
      %70 = arith.cmpi slt, %20, %69 : vector<8x128xi32>
      %71 = arith.andi %68, %70 : vector<8x128xi1>
      %72 = arith.mulf %50, %50 : vector<8x128xf32>
      %cst_36 = arith.constant 0.000000e+00 : f32
      %73 = vector.broadcast %cst_36 : f32 to vector<8x128xf32>
      %74 = arith.select %71, %72, %73 : vector<8x128xi1>, vector<8x128xf32>
      %cst_37 = arith.constant dense<0.000000e+00> : vector<8xf32>
      %75 = vector.multi_reduction <add>, %74, %cst_37 [1] : vector<8x128xf32> to vector<8xf32>
      %76 = vector.shape_cast %75 : vector<8xf32> to vector<8x1xf32>
      %cst_38 = arith.constant 1.562500e-02 : f32
      %77 = vector.broadcast %cst_38 : f32 to vector<8x1xf32>
      %78 = arith.mulf %76, %77 : vector<8x1xf32>
      %79 = vector.shape_cast %78 : vector<8x1xf32> to vector<8x1xf32>
      %80 = vector.broadcast %79 : vector<8x1xf32> to vector<8x128xf32>
      %81 = arith.select %71, %80, %66 : vector<8x128xi1>, vector<8x128xf32>
      %cst_39 = arith.constant 9.99999974E-6 : f32
      %82 = vector.broadcast %cst_39 : f32 to vector<8x128xf32>
      %83 = arith.addf %81, %82 : vector<8x128xf32>
      %84 = math.rsqrt %83 : vector<8x128xf32>
      %85 = arith.mulf %50, %84 : vector<8x128xf32>
      %c0_40 = arith.constant 0 : index
      %c0_41 = arith.constant 0 : index
      %86 = vector.load %arg8[%c0_40, %c0_41] : memref<8x1xf32, #tpu.memory_space<vmem>>, vector<8x1xf32>
      %87 = vector.broadcast %86 : vector<8x1xf32> to vector<8x128xf32>
      %88 = arith.mulf %85, %87 : vector<8x128xf32>
      %c0_42 = arith.constant 0 : index
      %c0_43 = arith.constant 0 : index
      %89 = vector.load %arg9[%c0_42, %c0_43] : memref<8x1xf32, #tpu.memory_space<vmem>>, vector<8x1xf32>
      %90 = vector.broadcast %89 : vector<8x1xf32> to vector<8x128xf32>
      %91 = arith.addf %88, %90 : vector<8x128xf32>
      %cst_44 = arith.constant 0.000000e+00 : f32
      %92 = vector.broadcast %cst_44 : f32 to vector<8x128xf32>
      %93 = arith.cmpf oge, %91, %92 : vector<8x128xf32>
      %cst_45 = arith.constant 0.00999999977 : f32
      %94 = vector.broadcast %cst_45 : f32 to vector<8x128xf32>
      %95 = arith.mulf %94, %91 : vector<8x128xf32>
      %96 = arith.select %93, %91, %95 : vector<8x128xi1>, vector<8x128xf32>
      %c0_46 = arith.constant 0 : index
      %c0_47 = arith.constant 0 : index
      %97 = vector.load %arg10[%c0_46, %c0_47] : memref<8x128xf32, #tpu.memory_space<vmem>>, vector<8x128xf32>
      tpu.vector_store %arg10[%c0_46, %c0_47], %96 {strides = array<i32>} : memref<8x128xf32, #tpu.memory_space<vmem>>, vector<8x128xf32>,
    } else {
    }
    return
  }
  func.func @transform_0(%arg0: i32, %arg1: i32, %arg2: i32) -> (i32, i32) {
    %c0_i32 = arith.constant 0 : i32
    return %arg0, %arg2 : i32, i32
  }
  func.func @transform_1(%arg0: i32, %arg1: i32, %arg2: i32) -> (i32, i32) {
    %c0_i32 = arith.constant 0 : i32
    return %arg2, %arg1 : i32, i32
  }
  func.func @transform_2(%arg0: i32, %arg1: i32, %arg2: i32) -> (i32, i32) {
    %c0_i32 = arith.constant 0 : i32
    return %arg0, %arg2 : i32, i32
  }
  func.func @transform_3(%arg0: i32, %arg1: i32, %arg2: i32) -> (i32, i32) {
    %c0_i32 = arith.constant 0 : i32
    return %arg2, %arg1 : i32, i32
  }
  func.func @transform_4(%arg0: i32, %arg1: i32, %arg2: i32) -> (i32, i32) {
    %c0_i32 = arith.constant 0 : i32
    %c0_i32_0 = arith.constant 0 : i32
    return %arg0, %c0_i32 : i32, i32
  }
  func.func @transform_5(%arg0: i32, %arg1: i32, %arg2: i32) -> (i32, i32) {
    %c0_i32 = arith.constant 0 : i32
    %c0_i32_0 = arith.constant 0 : i32
    return %arg0, %c0_i32 : i32, i32
  }
  func.func @transform_6(%arg0: i32, %arg1: i32, %arg2: i32) -> (i32, i32) {
    %c0_i32 = arith.constant 0 : i32
    %c0_i32_0 = arith.constant 0 : i32
    return %arg0, %c0_i32 : i32, i32
  }
  func.func @transform_7(%arg0: i32, %arg1: i32, %arg2: i32) -> (i32, i32) {
    %c0_i32 = arith.constant 0 : i32
    return %arg0, %arg1 : i32, i32
  }
}

module attributes {stable_mosaic.version = 11 : i64} {
  func.func @_conv_fused_kernel(%arg0: i32, %arg1: i32, %arg2: i32, %arg3: memref<3x16xbf16, #tpu.memory_space<vmem>>, %arg4: memref<16x32xbf16, #tpu.memory_space<vmem>>, %arg5: memref<3x1xf32, #tpu.memory_space<vmem>>, %arg6: memref<3x32xf32, #tpu.memory_space<vmem>>) attributes {dimension_semantics = [#tpu.dimension_semantics<parallel>, #tpu.dimension_semantics<parallel>, #tpu.dimension_semantics<arbitrary>], iteration_bounds = array<i64: 1, 1, 1>, scalar_prefetch = 0 : i64, scratch_operands = 0 : i64, tpu.core_type = #tpu.core_type<tc>, window_params = [{transform_indices = @transform_0, window_bounds = array<i64: 3, 16>}, {transform_indices = @transform_1, window_bounds = array<i64: 16, 32>}, {transform_indices = @transform_2, window_bounds = array<i64: 3, 1>}, {transform_indices = @transform_3, window_bounds = array<i64: 3, 32>}]} {
    %c0_i32 = arith.constant 0 : i32
    %0 = arith.cmpi eq, %arg2, %c0_i32 : i32
    %1 = arith.extui %0 : i1 to i32
    %c0_i32_0 = arith.constant 0 : i32
    %2 = arith.cmpi ne, %1, %c0_i32_0 : i32
    scf.if %2 {
      %cst_10 = arith.constant 0.000000e+00 : f32
      %12 = vector.broadcast %cst_10 : f32 to vector<3x32xf32>
      %c0_11 = arith.constant 0 : index
      %c0_12 = arith.constant 0 : index
      %13 = vector.load %arg6[%c0_11, %c0_12] : memref<3x32xf32, #tpu.memory_space<vmem>>, vector<3x32xf32>
      tpu.vector_store %arg6[%c0_11, %c0_12], %12 {strides = array<i32>} : memref<3x32xf32, #tpu.memory_space<vmem>>, vector<3x32xf32>,
    } else {
    }
    %c0 = arith.constant 0 : index
    %c0_1 = arith.constant 0 : index
    %3 = vector.load %arg3[%c0, %c0_1] : memref<3x16xbf16, #tpu.memory_space<vmem>>, vector<3x16xbf16>
    %c0_2 = arith.constant 0 : index
    %c0_3 = arith.constant 0 : index
    %4 = vector.load %arg4[%c0_2, %c0_3] : memref<16x32xbf16, #tpu.memory_space<vmem>>, vector<16x32xbf16>
    %cst = arith.constant dense<0.000000e+00> : vector<3x32xf32>
    %5 = tpu.matmul %3, %4, %cst {dimension_numbers = #tpu.dot_dimension_numbers<[1], [0], [0], [1], [0, 0, 1, 1], [], []>} : vector<3x16xbf16>, vector<16x32xbf16>, vector<3x32xf32> -> vector<3x32xf32>
    %c0_4 = arith.constant 0 : index
    %c0_5 = arith.constant 0 : index
    %6 = vector.load %arg6[%c0_4, %c0_5] : memref<3x32xf32, #tpu.memory_space<vmem>>, vector<3x32xf32>
    %7 = arith.addf %6, %5 : vector<3x32xf32>
    %c0_6 = arith.constant 0 : index
    %c0_7 = arith.constant 0 : index
    %8 = vector.load %arg6[%c0_6, %c0_7] : memref<3x32xf32, #tpu.memory_space<vmem>>, vector<3x32xf32>
    tpu.vector_store %arg6[%c0_6, %c0_7], %7 {strides = array<i32>} : memref<3x32xf32, #tpu.memory_space<vmem>>, vector<3x32xf32>,
    %c0_i32_8 = arith.constant 0 : i32
    %9 = arith.cmpi eq, %arg2, %c0_i32_8 : i32
    %10 = arith.extui %9 : i1 to i32
    %c0_i32_9 = arith.constant 0 : i32
    %11 = arith.cmpi ne, %10, %c0_i32_9 : i32
    scf.if %11 {
      %c0_10 = arith.constant 0 : index
      %c0_11 = arith.constant 0 : index
      %12 = vector.load %arg6[%c0_10, %c0_11] : memref<3x32xf32, #tpu.memory_space<vmem>>, vector<3x32xf32>
      %c0_12 = arith.constant 0 : index
      %c0_13 = arith.constant 0 : index
      %13 = vector.load %arg5[%c0_12, %c0_13] : memref<3x1xf32, #tpu.memory_space<vmem>>, vector<3x1xf32>
      %14 = vector.broadcast %13 : vector<3x1xf32> to vector<3x32xf32>
      %15 = arith.addf %12, %14 : vector<3x32xf32>
      %c0_14 = arith.constant 0 : index
      %c0_15 = arith.constant 0 : index
      %16 = vector.load %arg6[%c0_14, %c0_15] : memref<3x32xf32, #tpu.memory_space<vmem>>, vector<3x32xf32>
      tpu.vector_store %arg6[%c0_14, %c0_15], %15 {strides = array<i32>} : memref<3x32xf32, #tpu.memory_space<vmem>>, vector<3x32xf32>,
    } else {
    }
    return
  }
  func.func @transform_0(%arg0: i32, %arg1: i32, %arg2: i32) -> (i32, i32) {
    %c0_i32 = arith.constant 0 : i32
    return %arg0, %arg2 : i32, i32
  }
  func.func @transform_1(%arg0: i32, %arg1: i32, %arg2: i32) -> (i32, i32) {
    %c0_i32 = arith.constant 0 : i32
    return %arg2, %arg1 : i32, i32
  }
  func.func @transform_2(%arg0: i32, %arg1: i32, %arg2: i32) -> (i32, i32) {
    %c0_i32 = arith.constant 0 : i32
    %c0_i32_0 = arith.constant 0 : i32
    return %arg0, %c0_i32 : i32, i32
  }
  func.func @transform_3(%arg0: i32, %arg1: i32, %arg2: i32) -> (i32, i32) {
    %c0_i32 = arith.constant 0 : i32
    return %arg0, %arg1 : i32, i32
  }
}

module attributes {stable_mosaic.version = 11 : i64} {
  func.func @_conv_fused_kernel(%arg0: i32, %arg1: i32, %arg2: i32, %arg3: memref<3x8xbf16, #tpu.memory_space<vmem>>, %arg4: memref<8x128xbf16, #tpu.memory_space<vmem>>, %arg5: memref<3x1xf32, #tpu.memory_space<vmem>>, %arg6: memref<3x128xf32, #tpu.memory_space<vmem>>) attributes {dimension_semantics = [#tpu.dimension_semantics<parallel>, #tpu.dimension_semantics<parallel>, #tpu.dimension_semantics<arbitrary>], iteration_bounds = array<i64: 1, 1, 1>, scalar_prefetch = 0 : i64, scratch_operands = 0 : i64, tpu.core_type = #tpu.core_type<tc>, window_params = [{transform_indices = @transform_0, window_bounds = array<i64: 3, 8>}, {transform_indices = @transform_1, window_bounds = array<i64: 8, 128>}, {transform_indices = @transform_2, window_bounds = array<i64: 3, 1>}, {transform_indices = @transform_3, window_bounds = array<i64: 3, 128>}]} {
    %c0_i32 = arith.constant 0 : i32
    %0 = arith.cmpi eq, %arg2, %c0_i32 : i32
    %1 = arith.extui %0 : i1 to i32
    %c0_i32_0 = arith.constant 0 : i32
    %2 = arith.cmpi ne, %1, %c0_i32_0 : i32
    scf.if %2 {
      %cst_10 = arith.constant 0.000000e+00 : f32
      %12 = vector.broadcast %cst_10 : f32 to vector<3x128xf32>
      %c0_11 = arith.constant 0 : index
      %c0_12 = arith.constant 0 : index
      %13 = vector.load %arg6[%c0_11, %c0_12] : memref<3x128xf32, #tpu.memory_space<vmem>>, vector<3x128xf32>
      tpu.vector_store %arg6[%c0_11, %c0_12], %12 {strides = array<i32>} : memref<3x128xf32, #tpu.memory_space<vmem>>, vector<3x128xf32>,
    } else {
    }
    %c0 = arith.constant 0 : index
    %c0_1 = arith.constant 0 : index
    %3 = vector.load %arg3[%c0, %c0_1] : memref<3x8xbf16, #tpu.memory_space<vmem>>, vector<3x8xbf16>
    %c0_2 = arith.constant 0 : index
    %c0_3 = arith.constant 0 : index
    %4 = vector.load %arg4[%c0_2, %c0_3] : memref<8x128xbf16, #tpu.memory_space<vmem>>, vector<8x128xbf16>
    %cst = arith.constant dense<0.000000e+00> : vector<3x128xf32>
    %5 = tpu.matmul %3, %4, %cst {dimension_numbers = #tpu.dot_dimension_numbers<[1], [0], [0], [1], [0, 0, 1, 1], [], []>} : vector<3x8xbf16>, vector<8x128xbf16>, vector<3x128xf32> -> vector<3x128xf32>
    %c0_4 = arith.constant 0 : index
    %c0_5 = arith.constant 0 : index
    %6 = vector.load %arg6[%c0_4, %c0_5] : memref<3x128xf32, #tpu.memory_space<vmem>>, vector<3x128xf32>
    %7 = arith.addf %6, %5 : vector<3x128xf32>
    %c0_6 = arith.constant 0 : index
    %c0_7 = arith.constant 0 : index
    %8 = vector.load %arg6[%c0_6, %c0_7] : memref<3x128xf32, #tpu.memory_space<vmem>>, vector<3x128xf32>
    tpu.vector_store %arg6[%c0_6, %c0_7], %7 {strides = array<i32>} : memref<3x128xf32, #tpu.memory_space<vmem>>, vector<3x128xf32>,
    %c0_i32_8 = arith.constant 0 : i32
    %9 = arith.cmpi eq, %arg2, %c0_i32_8 : i32
    %10 = arith.extui %9 : i1 to i32
    %c0_i32_9 = arith.constant 0 : i32
    %11 = arith.cmpi ne, %10, %c0_i32_9 : i32
    scf.if %11 {
      %c0_10 = arith.constant 0 : index
      %c0_11 = arith.constant 0 : index
      %12 = vector.load %arg6[%c0_10, %c0_11] : memref<3x128xf32, #tpu.memory_space<vmem>>, vector<3x128xf32>
      %c0_12 = arith.constant 0 : index
      %c0_13 = arith.constant 0 : index
      %13 = vector.load %arg5[%c0_12, %c0_13] : memref<3x1xf32, #tpu.memory_space<vmem>>, vector<3x1xf32>
      %14 = vector.broadcast %13 : vector<3x1xf32> to vector<3x128xf32>
      %15 = arith.addf %12, %14 : vector<3x128xf32>
      %c0_14 = arith.constant 0 : index
      %c0_15 = arith.constant 0 : index
      %16 = vector.load %arg6[%c0_14, %c0_15] : memref<3x128xf32, #tpu.memory_space<vmem>>, vector<3x128xf32>
      tpu.vector_store %arg6[%c0_14, %c0_15], %15 {strides = array<i32>} : memref<3x128xf32, #tpu.memory_space<vmem>>, vector<3x128xf32>,
    } else {
    }
    return
  }
  func.func @transform_0(%arg0: i32, %arg1: i32, %arg2: i32) -> (i32, i32) {
    %c0_i32 = arith.constant 0 : i32
    return %arg0, %arg2 : i32, i32
  }
  func.func @transform_1(%arg0: i32, %arg1: i32, %arg2: i32) -> (i32, i32) {
    %c0_i32 = arith.constant 0 : i32
    return %arg2, %arg1 : i32, i32
  }
  func.func @transform_2(%arg0: i32, %arg1: i32, %arg2: i32) -> (i32, i32) {
    %c0_i32 = arith.constant 0 : i32
    %c0_i32_0 = arith.constant 0 : i32
    return %arg0, %c0_i32 : i32, i32
  }
  func.func @transform_3(%arg0: i32, %arg1: i32, %arg2: i32) -> (i32, i32) {
    %c0_i32 = arith.constant 0 : i32
    return %arg0, %arg1 : i32, i32
  }
}

</mosaic_0001>

<bundles_post_ra>
// kernel: skip_layer_forward.6
= control target key start
LH: loop header
LB: loop body
LE: loop exit
PB: predicated region body
PF: predicated region fallthrough
CT: control target
= control target key end

     0   :  { %vm51_vm0 = vcmask 1041408   ;;  %v193_v0 = vmov 0.0   ;;  %vm194_vm1 = vmmov 0   ;;  %v195_v5 = vmov 0   ;;  %s258_s1 = inlined_call_operand.vmem [shape: bf16[36,128], index: 1, kind: input, shape index: {}]   ;;  %s259_s2 = inlined_call_operand.vmem [shape: f32[8,1], index: 2, kind: input, shape index: {}]   ;;  %s260_s0 = inlined_call_operand.vmem [shape: bf16[8,36], index: 0, kind: input, shape index: {}]   ;;  %s261_s3 = inlined_call_operand.vmem [shape: f32[8,1], index: 3, kind: input, shape index: {}]   ;;  %s262_s4 = inlined_call_operand.vmem [shape: f32[8,1], index: 4, kind: input, shape index: {}]   ;;  %s263_s5 = inlined_call_operand.vmem [shape: bf16[8,128], index: 5, kind: output, shape index: {}]  }
   0x1   :  { %173 = vmatprep.subr.bf16.mxu0 %v193_v0  ;;  %v188_v1 = vld [vmem:[%s258_s1 + $0x10] ss:$0 sps:$4 sm:$0x33]   ;;  %179 = vmatprep.mubr.msk.bf16.mxu0 %vm194_vm1, %v193_v0  ;;  %v189_v3 = vld [vmem:[%s258_s1 + $0x8] sm:$0xff]   ;;  %v102_v4 = vld [vmem:[%s259_s2] sm:$0xff]  ;;  %vm47_vm2 = vcmask 293888   ;;  %v109_v8 = vlaneseq }
   0x2   :  { %v53_v2 = vsel %vm51_vm0, %v188_v1, 0  ;;  %186 = vset.pattern.permute.xlu0 %v195_v5  ;;  %187 = vset.pattern.permute.xlu1 %v195_v5  ;;  %v190_v6 = vld [vmem:[%s258_s1] sm:$0xff]  }
   0x3   :  { %174 = vmatpush3.bf16.msra.mxu0 %v53_v2  ;;  %105 = vperm.xlu0 %186, %v102_v4   ;;  %v26_v7 = vld [vmem:[%s260_s0] sm:$0xf]  ;;  %v110_v9 = vand.u32 127, %v109_v8 }
   0x4   :  { %175 = vmatprep.subr.bf16.mxu0 %v193_v0  ;;  %v142_v18 = vld [vmem:[%s261_s3] sm:$0xff] }
   0x5   :  { %vm119_vm3 = vcmp.ge.s32.totalorder %v110_v9, 64  ;;  %vm112_vm4 = vcmp.lt.s32.totalorder %v110_v9, 64  ;;  %v149_v29 = vld [vmem:[%s262_s4] sm:$0xff] }
   0x7   :  { %176 = vmatpush3.bf16.msra.mxu0 %v189_v3 }
   0x8   :  { %177 = vmatprep.subr.bf16.mxu0 %v193_v0 }
   0xb   :  { %178 = vmatpush3.bf16.msra.mxu0 %v190_v6 }
   0xe   :  { %180 = vmatmul.mubr.msk.bf16.vlgmr.msra.gmra.mxu0 %vm47_vm2, %v26_v7 }
  0x7e   :  { %v106_v10 = vpop.permute.xlu0 %105 }
  0xce   :  { %v89_v11 = vpop.f32.mrf.mxu0 }
  0xcf   :  { %v108_v12 = vadd.f32 %v106_v10, %v89_v11 }
  0xd0   :  { %v181_v13 = vpop.f32.mrf.mxu0 }
  0xd1   :  { %v122_v14 = vsel %vm119_vm3, %v108_v12, 0.0  ;;  %v114_v15 = vsel %vm112_vm4, %v108_v12, 0.0 }
  0xd2   :  { %123 = vadd.xlane.f32.xlu1 %v122_v14  ;;  %115 = vadd.xlane.f32.xlu0 %v114_v15  ;;  %v92_v16 = vpop.f32.mrf.mxu0 }
  0xd4   :  { %v182_v17 = vpop.f32.mrf.mxu0 }
  0xe3   :  { %145 = vperm.xlu1 %187, %v142_v18  }
 0x15b   :  { %v124_v19 = vpop.xlane.xlu1 %123  ;;  %v116_v20 = vpop.xlane.xlu0 %115 }
 0x15c   :  { %v125_v21 = vmul.f32 0.015625, %v124_v19  ;;  %v117_v22 = vmul.f32 0.015625, %v116_v20 }
 0x15e   :  { %v118_v23 = vsel %vm112_vm4, %v117_v22, 0.0 }
 0x15f   :  { %v126_v24 = vsel %vm119_vm3, %v125_v21, %v118_v23  ;;  %v146_v30 = vpop.permute.xlu1 %145 }
 0x160   :  { %v127_v25 = vsub.f32 %v108_v12, %v126_v24 }
 0x162   :  { %v128_v26 = vmul.f32 %v127_v25, %v127_v25 }
 0x164   :  { %v129_v27 = vsel %vm112_vm4, %v128_v26, 0.0  ;;  %v134_v28 = vsel %vm119_vm3, %v128_v26, 0.0 }
 0x165   :  { %130 = vadd.xlane.f32.xlu1 %v129_v27 }
 0x169   :  { %135 = vadd.xlane.f32.xlu1 %v134_v28 }
 0x17a   :  { %152 = vperm.xlu1 %187, %v149_v29  }
 0x1ee   :  { %v131_v31 = vpop.xlane.xlu1 %130 }
 0x1ef   :  { %v132_v32 = vmul.f32 0.015625, %v131_v31 }
 0x1f1   :  { %v133_v35 = vsel %vm112_vm4, %v132_v32, 0.0 }
 0x1f2   :  { %v136_v33 = vpop.xlane.xlu1 %135 }
 0x1f3   :  { %v137_v34 = vmul.f32 0.015625, %v136_v33 }
 0x1f5   :  { %v138_v36 = vsel %vm119_vm3, %v137_v34, %v133_v35 }
 0x1f6   :  { %v139_v37 = vadd.f32 1e-05, %v138_v36  ;;  %v153_v41 = vpop.permute.xlu1 %152 }
 0x1f8   :  { %191 = vrsqrt.f32 %v139_v37 }
 0x205   :  { %v192_v38 = vpop.eup %191 }
 0x206   :  { %v141_v39 = vmul.f32 %v192_v38, %v127_v25 }
 0x208   :  { %v148_v40 = vmul.f32 %v146_v30, %v141_v39 }
 0x20a   :  { %v155_v42 = vadd.f32 %v153_v41, %v148_v40 }
 0x20c   :  { %vm156_vm5 = vcmp.ge.f32.partialorder %v155_v42, 0.0  ;;  %v157_v43 = vmul.f32 0.01, %v155_v42 }
 0x20e   :  { %v158_v44 = vsel %vm156_vm5, %v155_v42, %v157_v43 }
 0x20f   :  { %v159_v45 = vpack.c.bf16 %v158_v44, %v158_v44 }
 0x211   :  { %160 = vst [vmem:[%s263_s5] sm:$0xf] %v159_v45 }

// kernel: tile.8
= control target key start
LH: loop header
LB: loop body
LE: loop exit
PB: predicated region body
PF: predicated region fallthrough
CT: control target
= control target key end

     0   :  { %s22_s0 = inlined_call_operand.vmem [shape: f32[8], index: 0, kind: input, shape index: {}]   ;;  %s23_s1 = inlined_call_operand.vmem [shape: f32[4,8], index: 1, kind: output, shape index: {}]  }
   0x1   :  { %v4_v0 = vld [vmem:[%s22_s0] ss:$0 sm:$0xff] }
   0x2   :  { %5 = vst [vmem:[%s23_s1] sm:$0xf] %v4_v0 }

// kernel: tile.0
= control target key start
LH: loop header
LB: loop body
LE: loop exit
PB: predicated region body
PF: predicated region fallthrough
CT: control target
= control target key end

     0   :  { %s67_s8 = smov 125   ;;  %vm8_vm0 = vcmask 7168   ;;  %s68_s11 = smov 126   ;;  %s118_s0 = inlined_call_operand.vmem [shape: f32[4,8], index: 0, kind: input, shape index: {}]   ;;  %s119_s1 = inlined_call_operand.vmem [shape: f32[32,1], index: 1, kind: output, shape index: {}]  }
   0x1   :  { %v5_v0 = vld [vmem:[%s118_s0] sm:$0xf]  ;;  %s66_s0 = smov 127   ;;  %s69_s12 = smov 124  }
   0x2   :  { %6 = vst [vmem:[#allocation0] sm:$0xf] %v5_v0  ;;  %s70_s13 = smov 123   ;;  %s71_s14 = smov 122  }
   0x3   :  { %s72_s15 = smov 121  }
   0x9   :  { %v10_v1 = vld [vmem:[#allocation0] sm:$0xf]  }
   0xa   :  { %v22_v2 = vld [vmem:[#allocation0] sm:$0xf]   ;;  %11 = vrot.lane.b32.xlu0 %v10_v1, %s66_s0 }
   0xb   :  { %23 = vrot.lane.b32.xlu1 %v22_v2, %s67_s8  ;;  %v16_v3 = vld [vmem:[#allocation0] sm:$0xf]  }
   0xc   :  { %v28_v4 = vld [vmem:[#allocation0] sm:$0xf]  }
   0xd   :  { %v7_v5 = vld [vmem:[#allocation0] sm:$0xf]  }
   0xe   :  { %9 = vst.msk [vmem:[%s119_s1] ss:$8 sm:$0xf] %vm8_vm0, %v7_v5   ;;  %17 = vrot.lane.b32.xlu0 %v16_v3, %s68_s11  ;;  %v34_v6 = vld [vmem:[#allocation0] sm:$0xf]  }
   0xf   :  { %29 = vrot.lane.b32.xlu1 %v28_v4, %s69_s12  ;;  %v40_v7 = vld [vmem:[#allocation0] sm:$0xf]  }
  0x10   :  { %v46_v8 = vld [vmem:[#allocation0] sm:$0xf]  }
  0x12   :  { %35 = vrot.lane.b32.xlu0 %v34_v6, %s70_s13 }
  0x13   :  { %41 = vrot.lane.b32.xlu1 %v40_v7, %s71_s14 }
  0x16   :  { %47 = vrot.lane.b32.xlu0 %v46_v8, %s72_s15 }
  0x7c   :  { %v12_v9 = vpop.permute.xlu0 %11  }
  0x7d   :  { %v24_v10 = vpop.permute.xlu1 %23   ;;  %52 = vst.msk [vmem:[%s119_s1 + $0x1] ss:$8 sm:$0xf] %vm8_vm0, %v12_v9  }
  0x7e   :  { %54 = vst.msk [vmem:[%s119_s1 + $0x3] ss:$8 sm:$0xf] %vm8_vm0, %v24_v10  }
  0x80   :  { %v18_v11 = vpop.permute.xlu0 %17  }
  0x81   :  { %v30_v12 = vpop.permute.xlu1 %29   ;;  %53 = vst.msk [vmem:[%s119_s1 + $0x2] ss:$8 sm:$0xf] %vm8_vm0, %v18_v11  }
  0x82   :  { %55 = vst.msk [vmem:[%s119_s1 + $0x4] ss:$8 sm:$0xf] %vm8_vm0, %v30_v12  }
  0x84   :  { %v36_v13 = vpop.permute.xlu0 %35  }
  0x85   :  { %v42_v14 = vpop.permute.xlu1 %41   ;;  %56 = vst.msk [vmem:[%s119_s1 + $0x5] ss:$8 sm:$0xf] %vm8_vm0, %v36_v13  }
  0x86   :  { %57 = vst.msk [vmem:[%s119_s1 + $0x6] ss:$8 sm:$0xf] %vm8_vm0, %v42_v14  }
  0x88   :  { %v48_v15 = vpop.permute.xlu0 %47  }
  0x89   :  { %58 = vst.msk [vmem:[%s119_s1 + $0x7] ss:$8 sm:$0xf] %vm8_vm0, %v48_v15  }

// kernel: skip_layer_forward.8
= control target key start
LH: loop header
LB: loop body
LE: loop exit
PB: predicated region body
PF: predicated region fallthrough
CT: control target
= control target key end

     0   :  { %s770_s18 = smov 0   ;;  %s772_s19 = smov 0   ;;  %s862_s0 = inlined_call_operand.vmem [shape: bf16[16,72], index: 0, kind: input, shape index: {}]   ;;  %s863_s1 = inlined_call_operand.vmem [shape: bf16[72,32], index: 1, kind: input, shape index: {}]   ;;  %s864_s2 = inlined_call_operand.vmem [shape: f32[16,1], index: 2, kind: input, shape index: {}]   ;;  %s865_s3 = inlined_call_operand.vmem [shape: f32[16,1], index: 3, kind: input, shape index: {}]   ;;  %s866_s4 = inlined_call_operand.vmem [shape: f32[16,1], index: 4, kind: input, shape index: {}]   ;;  %s867_s5 = inlined_call_operand.vmem [shape: bf16[16,32], index: 5, kind: output, shape index: {}]  }
   0x1   :  { %s774_s20 = smov 0  }
   0x2 LB: > { %s34_s21 = sadd.s32 1, %s731_s19  ;;  %p643_p0 = scmp.ge.s32.totalorder %s735_s20, 1  ;;  %s735_s20 = sphi %s774_s20, %s15_s20   ;;  %s731_s19 = sphi %s772_s19, %s871_s19   ;;  %s727_s18 = sphi %s770_s18, %s870_s18  }
   0x3   : > { %p36_p1 = scmp.ge.s32.totalorder %s34_s21, 2  ;;  %p255_p2 = scmp.lt.s32.totalorder %s735_s20, 3 }
   0x5   : > { %s873_s21 = smov (%p36_p1, %s34_s21), 0  ;;  %p256_p3 = pnand %p643_p0, %p255_p2 }
   0x6   : > { %p307_p4 = scmp.lt.s32.totalorder (!%p256_p3), %s727_s18, 1 }
   0x7   : > { %259 = sbr.rel (%p256_p3) target bundleno = 561 (0x231), region = 40 }
   0xc   : > { %v706_v0 = vld [vmem:[%s863_s1 + $0x20] ss:$0 sps:$4 sm:$0xff]   ;;  %vm390_vm0 = vcmask 1043456   ;;  %v737_v1 = vmov 0.0   ;;  %vm738_vm1 = vmmov 0   ;;  %v707_v3 = vld [vmem:[%s863_s1 + $0x18] sm:$0xff]   ;;  %v449_v11 = vlaneseq }
   0xd   : > { %663 = vmatprep.subr.bf16.mxu0 %v737_v1  ;;  %v392_v2 = vsel %vm390_vm0, %v706_v0, 0  ;;  %673 = vmatprep.mubr.msk.bf16.mxu0 %vm738_vm1, %v737_v1  ;;  %s875_s18 = smov (!%p307_p4, %s727_s18), 1  ;;  %vm347_vm2 = vcmask 261120   ;;  %v739_v4 = vmov 0   ;;  %v708_v5 = vld [vmem:[%s863_s1 + $0x10] sm:$0xff]   ;;  %v709_v7 = vld [vmem:[%s863_s1 + $0x8] sm:$0xff]  }
   0xe   : > { %664 = vmatpush3.bf16.msra.mxu0 %v392_v2  ;;  %704 = vset.pattern.permute.xlu0 %v739_v4  ;;  %348 = vst.msk [vmem:[#allocation2] sm:$0xff] %vm347_vm2, %v737_v1  ;;  %s801_s28 = sshll.u32 %s875_s18, 3  ;;  %s644_s9 = sshll.u32 %s875_s18, 2  ;;  %v710_v8 = vld [vmem:[%s863_s1] sm:$0xff]   ;;  %vm386_vm3 = vcmask 588800   ;;  %v450_v15 = vand.u32 127, %v449_v11 }
   0xf   : > { %665 = vmatprep.subr.bf16.mxu0 %v737_v1  ;;  %705 = vset.pattern.permute.xlu1 %v739_v4  ;;  %s326_s6 = scalar_lea.vmem %s864_s2, %s801_s28  ;;  %s313_s14 = scalar_lea.vmem %s862_s0, %s644_s9  ;;  %vm504_vm9 = vcmask 257024  }
  0x10   : > { %v442_v6 = vld [vmem:[%s326_s6] sm:$0xff]  ;;  %vm460_vm4 = vcmp.ge.s32.totalorder %v450_v15, 16  ;;  %vm461_vm5 = vcmp.lt.s32.totalorder %v450_v15, 32  ;;  %vm452_vm7 = vcmp.lt.s32.totalorder %v450_v15, 16  ;;  %s330_s17 = scalar_lea.vmem %s865_s3, %s801_s28  ;;  %s334_s24 = scalar_lea.vmem %s866_s4, %s801_s28 }
  0x11   : > { %445 = vperm.xlu0 %704, %v442_v6   ;;  %v349_v9 = vld [vmem:[%s313_s14] sm:$0xf]  ;;  %vm820_vm6 = vmand %vm460_vm4, %vm461_vm5  ;;  %s341_s27 = scalar_lea.vmem %s867_s5, %s644_s9 }
  0x12   : > { %666 = vmatpush3.bf16.msra.mxu0 %v707_v3  ;;  %v486_v26 = vld [vmem:[%s330_s17] sm:$0xff] }
  0x13   : > { %667 = vmatprep.subr.bf16.mxu0 %v737_v1  ;;  %v493_v39 = vld [vmem:[%s334_s24] sm:$0xff] }
  0x15   : > { %v434_v10 = vld [vmem:[#allocation2] sm:$0xff] }
  0x16   : > { %668 = vmatpush3.bf16.msra.mxu0 %v708_v5 }
  0x17   : > { %669 = vmatprep.subr.bf16.mxu0 %v737_v1 }
  0x1a   : > { %670 = vmatpush3.bf16.msra.mxu0 %v709_v7 }
  0x1b   : > { %671 = vmatprep.subr.bf16.mxu0 %v737_v1 }
  0x1e   : > { %672 = vmatpush3.bf16.msra.mxu0 %v710_v8 }
  0x21   : > { %674 = vmatmul.mubr.msk.bf16.vlgmr.msra.gmra.mxu0 %vm386_vm3, %v349_v9 }
  0x8c   : > { %v446_v18 = vpop.permute.xlu0 %445 }
  0xe1   : > { %v428_v12 = vpop.f32.mrf.mxu0 }
  0xe2   : > { %v435_v13 = vadd.f32 %v434_v10, %v428_v12 }
  0xe3   : > { %v675_v14 = vpop.f32.mrf.mxu0 }
  0xe4   : > { %437 = vst.msk [vmem:[#allocation2] sm:$0xff] %vm347_vm2, %v435_v13 }
  0xe5   : > { %v431_v16 = vpop.f32.mrf.mxu0 }
  0xe7   : > { %v676_v17 = vpop.f32.mrf.mxu0 }
  0xeb   : > { %v441_v19 = vld [vmem:[#allocation2] sm:$0xff] }
  0xec   : > { %v448_v21 = vadd.f32 %v446_v18, %v441_v19 }
  0xee   : > { %v463_v22 = vsel %vm820_vm6, %v448_v21, 0.0  ;;  %v454_v23 = vsel %vm452_vm7, %v448_v21, 0.0 }
  0xef   : > { %v464_v24 = vsel %vm347_vm2, %v463_v22, 0.0  ;;  %v455_v25 = vsel %vm347_vm2, %v454_v23, 0.0 }
  0xf0   : > { %465 = vadd.xlane.f32.xlu1 %v464_v24  ;;  %456 = vadd.xlane.f32.xlu0 %v455_v25 }
 0x101   : > { %489 = vperm.xlu1 %705, %v486_v26  }
 0x179   : > { %v466_v27 = vpop.xlane.xlu1 %465  ;;  %v457_v28 = vpop.xlane.xlu0 %456 }
 0x17a   : > { %v467_v29 = vmul.f32 0.0625, %v466_v27  ;;  %v458_v30 = vmul.f32 0.0625, %v457_v28 }
 0x17c   : > { %v459_v31 = vsel %vm452_vm7, %v458_v30, 0.0 }
 0x17d   : > { %v468_v32 = vsel %vm820_vm6, %v467_v29, %v459_v31  ;;  %v490_v40 = vpop.permute.xlu1 %489 }
 0x17e   : > { %v469_v33 = vsub.f32 %v448_v21, %v468_v32 }
 0x180   : > { %v470_v34 = vmul.f32 %v469_v33, %v469_v33 }
 0x182   : > { %v471_v35 = vsel %vm452_vm7, %v470_v34, 0.0  ;;  %v477_v37 = vsel %vm820_vm6, %v470_v34, 0.0 }
 0x183   : > { %v472_v36 = vsel %vm347_vm2, %v471_v35, 0.0  ;;  %v478_v38 = vsel %vm347_vm2, %v477_v37, 0.0 }
 0x184   : > { %473 = vadd.xlane.f32.xlu1 %v472_v36 }
 0x188   : > { %479 = vadd.xlane.f32.xlu1 %v478_v38 }
 0x199   : > { %496 = vperm.xlu1 %705, %v493_v39  }
 0x20d   : > { %v474_v41 = vpop.xlane.xlu1 %473 }
 0x20e   : > { %v475_v42 = vmul.f32 0.0625, %v474_v41 }
 0x210   : > { %v476_v45 = vsel %vm452_vm7, %v475_v42, 0.0 }
 0x211   : > { %v480_v43 = vpop.xlane.xlu1 %479 }
 0x212   : > { %v481_v44 = vmul.f32 0.0625, %v480_v43 }
 0x214   : > { %v482_v46 = vsel %vm820_vm6, %v481_v44, %v476_v45 }
 0x215   : > { %v483_v47 = vadd.f32 1e-05, %v482_v46  ;;  %v497_v51 = vpop.permute.xlu1 %496 }
 0x217   : > { %711 = vrsqrt.f32 %v483_v47 }
 0x224   : > { %v712_v48 = vpop.eup %711 }
 0x225   : > { %v485_v49 = vmul.f32 %v712_v48, %v469_v33 }
 0x227   : > { %v492_v50 = vmul.f32 %v490_v40, %v485_v49 }
 0x229   : > { %v499_v52 = vadd.f32 %v497_v51, %v492_v50 }
 0x22b   : > { %vm500_vm8 = vcmp.ge.f32.partialorder %v499_v52, 0.0  ;;  %v501_v53 = vmul.f32 0.01, %v499_v52 }
 0x22d   : > { %v502_v54 = vsel %vm500_vm8, %v499_v52, %v501_v53 }
 0x22e   : > { %v503_v55 = vpack.c.bf16 %v502_v54, %v502_v54 }
 0x230   : > { %505 = vst.msk [vmem:[%s341_s27] sm:$0xf] %vm504_vm9, %v503_v55 }
 0x231 PF: > { %s15_s20 = sadd.s32 1, %s735_s20   ;;  %s870_s18 = smov %s731_s19 }
 0x232   : > { %p12_p5 = scmp.ge.s32.totalorder %s15_s20, 4   ;;  %s871_s19 = smov %s873_s21 }
 0x234   :  { %14 = sbr.rel (!%p12_p5) target bundleno = 2 (0x2), region = 90 }

// kernel: skip_layer_forward.10
= control target key start
LH: loop header
LB: loop body
LE: loop exit
PB: predicated region body
PF: predicated region fallthrough
CT: control target
= control target key end

     0   :  { %s589_s12 = smov 0   ;;  %s591_s13 = smov 0   ;;  %s632_s0 = inlined_call_operand.vmem [shape: bf16[32,16], index: 0, kind: input, shape index: {}]   ;;  %s633_s1 = inlined_call_operand.vmem [shape: bf16[16,32], index: 1, kind: input, shape index: {}]   ;;  %s634_s2 = inlined_call_operand.vmem [shape: f32[32,1], index: 2, kind: input, shape index: {}]   ;;  %s635_s3 = inlined_call_operand.vmem [shape: bf16[32,32], index: 3, kind: output, shape index: {}]  }
   0x1   :  { %s593_s14 = smov 0  }
   0x2 LB: > { %s32_s15 = sadd.s32 1, %s560_s13  ;;  %p488_p0 = scmp.ge.s32.totalorder %s564_s14, 1  ;;  %s564_s14 = sphi %s593_s14, %s13_s14   ;;  %s560_s13 = sphi %s591_s13, %s637_s13   ;;  %s556_s12 = sphi %s589_s12, %s636_s12  }
   0x3   : > { %p34_p1 = scmp.ge.s32.totalorder %s32_s15, 2  ;;  %p191_p2 = scmp.lt.s32.totalorder %s564_s14, 3 }
   0x5   : > { %s639_s15 = smov (%p34_p1, %s32_s15), 0  ;;  %p192_p3 = pnand %p488_p0, %p191_p2 }
   0x6   : > { %s489_s18 = sshll.u32 (!%p192_p3), %s556_s12, 1 }
   0x7   : > { %195 = sbr.rel (%p192_p3) target bundleno = 229 (0xe5), region = 32  ;;  %p235_p4 = scmp.lt.s32.totalorder (!%p192_p3), %s489_s18, 3 }
   0xc   : > { %vm272_vm0 = vcmask 261120   ;;  %v566_v0 = vmov 0.0   ;;  %v540_v1 = vld [vmem:[%s633_s1] sm:$0xff]   ;;  %vm567_vm1 = vmmov 0   ;;  %v568_v2 = vmov 0   ;;  %s641_s18 = smov (!%p235_p4, %s489_s18), 3 }
   0xd   : > { %273 = vst.msk [vmem:[#allocation2] sm:$0xff] %vm272_vm0, %v566_v0  ;;  %274 = vst.msk [vmem:[#allocation2 + $0x8] sm:$0xff] %vm272_vm0, %v566_v0  ;;  %506 = vmatprep.subr.bf16.mxu0 %v566_v0  ;;  %508 = vmatprep.mubr.msk.bf16.mxu0 %vm567_vm1, %v566_v0  ;;  %s490_s19 = sshll.u32 %s641_s18, 2  ;;  %s492_s20 = sshll.u32 %s641_s18, 3  ;;  %vm290_vm2 = vcmask 130048   ;;  %vm369_vm3 = vcmask 257024  }
   0xe   : > { %539 = vset.pattern.permute.xlu0 %v568_v2  ;;  %507 = vmatpush3.bf16.msra.mxu0 %v540_v1  ;;  %s241_s23 = scalar_lea.vmem %s632_s0, %s490_s19  ;;  %s256_s26 = scalar_lea.vmem %s634_s2, %s492_s20 }
   0xf   : > { %v541_v3 = vld [vmem:[%s241_s23] sm:$0xff]   ;;  %v348_v5 = vld [vmem:[%s256_s26 + $0x8] sm:$0xff]  ;;  %s265_s29 = scalar_lea.vmem %s635_s3, %s490_s19 }
  0x10   : > { %v347_v4 = vld [vmem:[%s256_s26] sm:$0xff] }
  0x11   : > { %509 = vmatmul.mubr.msk.bf16.vlgmr.msra.gmra.mxu0 %vm290_vm2, %v541_v3  ;;  %351 = vperm.xlu0 %539, %v347_v4  }
  0x14   : > { %v335_v6 = vld [vmem:[#allocation2] sm:$0xff]  ;;  %v336_v10 = vld [vmem:[#allocation2 + $0x8] sm:$0xff] }
  0x15   : > { %356 = vperm.xlu0 %539, %v348_v5  }
  0x8c   : > { %v352_v14 = vpop.permute.xlu0 %351 }
  0x90   : > { %v357_v18 = vpop.permute.xlu0 %356 }
  0xd1   : > { %v328_v7 = vpop.f32.mrf.mxu0 }
  0xd2   : > { %v337_v8 = vadd.f32 %v335_v6, %v328_v7 }
  0xd3   : > { %v510_v9 = vpop.f32.mrf.mxu0 }
  0xd4   : > { %340 = vst.msk [vmem:[#allocation2] sm:$0xff] %vm272_vm0, %v337_v8 }
  0xd5   : > { %v331_v11 = vpop.f32.mrf.mxu0 }
  0xd6   : > { %v338_v12 = vadd.f32 %v336_v10, %v331_v11 }
  0xd7   : > { %v511_v13 = vpop.f32.mrf.mxu0 }
  0xd8   : > { %341 = vst.msk [vmem:[#allocation2 + $0x8] sm:$0xff] %vm272_vm0, %v338_v12 }
  0xdb   : > { %v345_v15 = vld [vmem:[#allocation2] sm:$0xff] }
  0xdc   : > { %v359_v16 = vadd.f32 %v352_v14, %v345_v15 }
  0xde   : > { %v502_v17 = vpack.c.bf16 %v359_v16, %v359_v16 }
  0xdf   : > { %v346_v19 = vld [vmem:[#allocation2 + $0x8] sm:$0xff] }
  0xe0   : > { %370 = vst.msk [vmem:[%s265_s29] sm:$0xf] %vm369_vm3, %v502_v17  ;;  %v360_v20 = vadd.f32 %v357_v18, %v346_v19 }
  0xe2   : > { %v503_v21 = vpack.c.bf16 %v360_v20, %v360_v20 }
  0xe4   : > { %371 = vst.msk [vmem:[%s265_s29 + $0x4] sm:$0xf] %vm369_vm3, %v503_v21 }
  0xe5 PF: > { %s13_s14 = sadd.s32 1, %s564_s14   ;;  %s636_s12 = smov %s560_s13 }
  0xe6   : > { %p10_p5 = scmp.ge.s32.totalorder %s13_s14, 4   ;;  %s637_s13 = smov %s639_s15 }
  0xe8   :  { %12 = sbr.rel (!%p10_p5) target bundleno = 2 (0x2), region = 76 }

// kernel: skip_layer_forward.11
= control target key start
LH: loop header
LB: loop body
LE: loop exit
PB: predicated region body
PF: predicated region fallthrough
CT: control target
= control target key end

     0   :  { %vm83_vm0 = vcmask 1043456   ;;  %v338_v0 = vmov 0.0   ;;  %vm339_vm1 = vmmov 0   ;;  %v340_v7 = vmov 0   ;;  %s437_s3 = inlined_call_operand.vmem [shape: bf16[72,128], index: 3, kind: input, shape index: {}]   ;;  %s438_s1 = inlined_call_operand.vmem [shape: bf16[72,128], index: 1, kind: input, shape index: {}]   ;;  %s439_s4 = inlined_call_operand.vmem [shape: f32[8,1], index: 4, kind: input, shape index: {}]   ;;  %s440_s2 = inlined_call_operand.vmem [shape: bf16[8,72], index: 2, kind: input, shape index: {}]   ;;  %s441_s0 = inlined_call_operand.vmem [shape: bf16[8,72], index: 0, kind: input, shape index: {}]   ;;  %s442_s5 = inlined_call_operand.vmem [shape: f32[8,1], index: 5, kind: input, shape index: {}]   ;;  %s443_s6 = inlined_call_operand.vmem [shape: f32[8,1], index: 6, kind: input, shape index: {}]   ;;  %s444_s7 = inlined_call_operand.vmem [shape: f32[8,128], index: 7, kind: output, shape index: {}]  }
   0x1   :  { %293 = vmatprep.subr.bf16.mxu0 %v338_v0  ;;  %307 = vmatprep.subr.bf16.mxu1 %v338_v0  ;;  %v326_v1 = vld [vmem:[%s437_s3 + $0x20] ss:$0 sps:$4 sm:$0xff]   ;;  %v328_v5 = vld [vmem:[%s437_s3 + $0x18] sm:$0xff]   ;;  %v330_v8 = vld [vmem:[%s437_s3 + $0x10] sm:$0xff]   ;;  %vm79_vm2 = vcmask 588800   ;;  %v214_v17 = vlaneseq }
   0x2   :  { %v327_v2 = vld [vmem:[%s438_s1 + $0x20] ss:$0 sps:$4 sm:$0xff]   ;;  %303 = vmatprep.mubr.msk.bf16.mxu0 %vm339_vm1, %v338_v0  ;;  %317 = vmatprep.mubr.msk.bf16.mxu1 %vm339_vm1, %v338_v0  ;;  %v85_v3 = vsel %vm83_vm0, %v326_v1, 0  ;;  %v329_v6 = vld [vmem:[%s438_s1 + $0x18] sm:$0xff]   ;;  %v331_v9 = vld [vmem:[%s438_s1 + $0x10] sm:$0xff]  }
   0x3   :  { %294 = vmatpush3.bf16.msra.mxu0 %v85_v3  ;;  %v158_v4 = vsel %vm83_vm0, %v327_v2, 0  ;;  %324 = vset.pattern.permute.xlu0 %v340_v7  ;;  %v207_v10 = vld [vmem:[%s439_s4] sm:$0xff]  ;;  %v332_v11 = vld [vmem:[%s437_s3 + $0x8] sm:$0xff]   ;;  %v215_v20 = vand.u32 127, %v214_v17 }
   0x4   :  { %308 = vmatpush3.bf16.msra.mxu1 %v158_v4  ;;  %295 = vmatprep.subr.bf16.mxu0 %v338_v0  ;;  %v333_v12 = vld [vmem:[%s438_s1 + $0x8] sm:$0xff]   ;;  %v334_v13 = vld [vmem:[%s437_s3] sm:$0xff]  }
   0x5   :  { %309 = vmatprep.subr.bf16.mxu1 %v338_v0  ;;  %325 = vset.pattern.permute.xlu1 %v340_v7  ;;  %v335_v14 = vld [vmem:[%s438_s1] sm:$0xff]   ;;  %vm224_vm3 = vcmp.ge.s32.totalorder %v215_v20, 64  ;;  %vm217_vm4 = vcmp.lt.s32.totalorder %v215_v20, 64 }
   0x6   :  { %210 = vperm.xlu0 %324, %v207_v10   ;;  %v42_v15 = vld [vmem:[%s440_s2] sm:$0xf] }
   0x7   :  { %296 = vmatpush3.bf16.msra.mxu0 %v328_v5  ;;  %v32_v16 = vld [vmem:[%s441_s0] sm:$0xf] }
   0x8   :  { %310 = vmatpush3.bf16.msra.mxu1 %v329_v6  ;;  %297 = vmatprep.subr.bf16.mxu0 %v338_v0  ;;  %v247_v32 = vld [vmem:[%s442_s5] sm:$0xff] }
   0x9   :  { %311 = vmatprep.subr.bf16.mxu1 %v338_v0  ;;  %v254_v43 = vld [vmem:[%s443_s6] sm:$0xff] }
   0xb   :  { %298 = vmatpush3.bf16.msra.mxu0 %v330_v8 }
   0xc   :  { %312 = vmatpush3.bf16.msra.mxu1 %v331_v9  ;;  %299 = vmatprep.subr.bf16.mxu0 %v338_v0 }
   0xd   :  { %313 = vmatprep.subr.bf16.mxu1 %v338_v0 }
   0xf   :  { %300 = vmatpush3.bf16.msra.mxu0 %v332_v11 }
  0x10   :  { %314 = vmatpush3.bf16.msra.mxu1 %v333_v12  ;;  %301 = vmatprep.subr.bf16.mxu0 %v338_v0 }
  0x11   :  { %315 = vmatprep.subr.bf16.mxu1 %v338_v0 }
  0x13   :  { %302 = vmatpush3.bf16.msra.mxu0 %v334_v13 }
  0x14   :  { %316 = vmatpush3.bf16.msra.mxu1 %v335_v14 }
  0x16   :  { %304 = vmatmul.mubr.msk.bf16.vlgmr.msra.gmra.mxu0 %vm79_vm2, %v42_v15 }
  0x17   :  { %318 = vmatmul.mubr.msk.bf16.vlgmr.msra.gmra.mxu1 %vm79_vm2, %v32_v16 }
  0x81   :  { %v211_v24 = vpop.permute.xlu0 %210 }
  0xd6   :  { %v121_v18 = vpop.f32.mrf.mxu0 }
  0xd7   :  { %v194_v19 = vpop.f32.mrf.mxu1 }
  0xd8   :  { %v195_v21 = vadd.f32 %v194_v19, %v121_v18  ;;  %v305_v22 = vpop.f32.mrf.mxu0 }
  0xd9   :  { %v319_v23 = vpop.f32.mrf.mxu1 }
  0xda   :  { %v124_v25 = vpop.f32.mrf.mxu0  ;;  %v213_v28 = vadd.f32 %v211_v24, %v195_v21 }
  0xdb   :  { %v197_v26 = vpop.f32.mrf.mxu1 }
  0xdc   :  { %v306_v27 = vpop.f32.mrf.mxu0  ;;  %v227_v30 = vsel %vm224_vm3, %v213_v28, 0.0  ;;  %v219_v31 = vsel %vm217_vm4, %v213_v28, 0.0 }
  0xdd   :  { %v320_v29 = vpop.f32.mrf.mxu1  ;;  %228 = vadd.xlane.f32.xlu1 %v227_v30  ;;  %220 = vadd.xlane.f32.xlu0 %v219_v31 }
  0xee   :  { %250 = vperm.xlu1 %325, %v247_v32  }
 0x166   :  { %v229_v33 = vpop.xlane.xlu1 %228  ;;  %v221_v34 = vpop.xlane.xlu0 %220 }
 0x167   :  { %v230_v35 = vmul.f32 0.015625, %v229_v33  ;;  %v222_v36 = vmul.f32 0.015625, %v221_v34 }
 0x169   :  { %v223_v37 = vsel %vm217_vm4, %v222_v36, 0.0 }
 0x16a   :  { %v231_v38 = vsel %vm224_vm3, %v230_v35, %v223_v37  ;;  %v251_v44 = vpop.permute.xlu1 %250 }
 0x16b   :  { %v232_v39 = vsub.f32 %v213_v28, %v231_v38 }
 0x16d   :  { %v233_v40 = vmul.f32 %v232_v39, %v232_v39 }
 0x16f   :  { %v234_v41 = vsel %vm217_vm4, %v233_v40, 0.0  ;;  %v239_v42 = vsel %vm224_vm3, %v233_v40, 0.0 }
 0x170   :  { %235 = vadd.xlane.f32.xlu1 %v234_v41 }
 0x174   :  { %240 = vadd.xlane.f32.xlu1 %v239_v42 }
 0x185   :  { %257 = vperm.xlu1 %325, %v254_v43  }
 0x1f9   :  { %v236_v45 = vpop.xlane.xlu1 %235 }
 0x1fa   :  { %v237_v46 = vmul.f32 0.015625, %v236_v45 }
 0x1fc   :  { %v238_v49 = vsel %vm217_vm4, %v237_v46, 0.0 }
 0x1fd   :  { %v241_v47 = vpop.xlane.xlu1 %240 }
 0x1fe   :  { %v242_v48 = vmul.f32 0.015625, %v241_v47 }
 0x200   :  { %v243_v50 = vsel %vm224_vm3, %v242_v48, %v238_v49 }
 0x201   :  { %v244_v51 = vadd.f32 1e-05, %v243_v50  ;;  %v258_v55 = vpop.permute.xlu1 %257 }
 0x203   :  { %336 = vrsqrt.f32 %v244_v51 }
 0x210   :  { %v337_v52 = vpop.eup %336 }
 0x211   :  { %v246_v53 = vmul.f32 %v337_v52, %v232_v39 }
 0x213   :  { %v253_v54 = vmul.f32 %v251_v44, %v246_v53 }
 0x215   :  { %v260_v56 = vadd.f32 %v258_v55, %v253_v54 }
 0x217   :  { %vm261_vm5 = vcmp.ge.f32.partialorder %v260_v56, 0.0  ;;  %v262_v57 = vmul.f32 0.01, %v260_v56 }
 0x219   :  { %v263_v58 = vsel %vm261_vm5, %v260_v56, %v262_v57 }
 0x21a   :  { %264 = vst [vmem:[%s444_s7] sm:$0xff] %v263_v58 }

// kernel: skip_layer_forward.9
= control target key start
LH: loop header
LB: loop body
LE: loop exit
PB: predicated region body
PF: predicated region fallthrough
CT: control target
= control target key end

     0   :  { %vm19_vm0 = vcmask 256000   ;;  %v109_v0 = vmov 0.0   ;;  %vm110_vm1 = vmmov 0   ;;  %v111_v2 = vmov 0   ;;  %s159_s3 = inlined_call_operand.vmem [shape: f32[3,32], index: 3, kind: output, shape index: {}]   ;;  %s160_s1 = inlined_call_operand.vmem [shape: bf16[16,32], index: 1, kind: input, shape index: {}]   ;;  %s161_s0 = inlined_call_operand.vmem [shape: bf16[3,16], index: 0, kind: input, shape index: {}]   ;;  %s162_s2 = inlined_call_operand.vmem [shape: f32[3,1], index: 2, kind: input, shape index: {}]  }
   0x1   :  { %20 = vst.msk [vmem:[%s159_s3] sm:$0x7] %vm19_vm0, %v109_v0  ;;  %98 = vmatprep.subr.bf16.mxu0 %v109_v0  ;;  %v108_v1 = vld [vmem:[%s160_s1] sm:$0xff]   ;;  %100 = vmatprep.mubr.msk.bf16.mxu0 %vm110_vm1, %v109_v0  ;;  %vm30_vm2 = vcmask 130048  }
   0x2   :  { %107 = vset.pattern.permute.xlu0 %v111_v2  ;;  %v82_v3 = vld [vmem:[%s162_s2] sm:$0x7]  ;;  %99 = vmatpush3.bf16.msra.mxu0 %v108_v1 }
   0x3   :  { %v21_v4 = vld [vmem:[%s161_s0] sm:$0x3]  ;;  %85 = vperm.xlu0 %107, %v82_v3  }
   0x5   :  { %101 = vmatmul.mubr.msk.bf16.vlgmr.msra.gmra.mxu0 %vm30_vm2, %v21_v4 }
   0x8   :  { %v74_v5 = vld [vmem:[%s159_s3] sm:$0x7] }
  0x7e   :  { %v86_v11 = vpop.permute.xlu0 %85 }
  0xc5   :  { %v68_v6 = vpop.f32.mrf.mxu0 }
  0xc6   :  { %v75_v7 = vadd.f32 %v74_v5, %v68_v6 }
  0xc7   :  { %v102_v8 = vpop.f32.mrf.mxu0 }
  0xc8   :  { %77 = vst.msk [vmem:[%s159_s3] sm:$0x7] %vm19_vm0, %v75_v7 }
  0xc9   :  { %v71_v9 = vpop.f32.mrf.mxu0 }
  0xcb   :  { %v103_v10 = vpop.f32.mrf.mxu0 }
  0xcf   :  { %v81_v12 = vld [vmem:[%s159_s3] sm:$0x7] }
  0xd0   :  { %v88_v13 = vadd.f32 %v86_v11, %v81_v12 }
  0xd2   :  { %89 = vst.msk [vmem:[%s159_s3] sm:$0x7] %vm19_vm0, %v88_v13 }

// kernel: skip_layer_forward.7
= control target key start
LH: loop header
LB: loop body
LE: loop exit
PB: predicated region body
PF: predicated region fallthrough
CT: control target
= control target key end

     0   :  { %vm26_vm0 = vcmask 1043456   ;;  %v102_v0 = vmov 0.0   ;;  %vm103_vm1 = vmmov 0   ;;  %v104_v3 = vmov 0   ;;  %s149_s3 = inlined_call_operand.vmem [shape: f32[3,128], index: 3, kind: output, shape index: {}]   ;;  %s150_s1 = inlined_call_operand.vmem [shape: bf16[8,128], index: 1, kind: input, shape index: {}]   ;;  %s151_s0 = inlined_call_operand.vmem [shape: bf16[3,8], index: 0, kind: input, shape index: {}]   ;;  %s152_s2 = inlined_call_operand.vmem [shape: f32[3,1], index: 2, kind: input, shape index: {}]  }
   0x1   :  { %19 = vst [vmem:[%s149_s3] sm:$0x7] %v102_v0  ;;  %92 = vmatprep.subr.bf16.mxu0 %v102_v0  ;;  %v21_v1 = vld [vmem:[%s150_s1] sm:$0xf]  ;;  %94 = vmatprep.mubr.msk.bf16.mxu0 %vm103_vm1, %v102_v0  ;;  %vm22_vm2 = vcmask 64512  }
   0x2   :  { %v28_v2 = vsel %vm26_vm0, %v21_v1, 0  ;;  %101 = vset.pattern.permute.xlu0 %v104_v3  ;;  %v77_v4 = vld [vmem:[%s152_s2] sm:$0x7] }
   0x3   :  { %93 = vmatpush3.bf16.msra.mxu0 %v28_v2  ;;  %v20_v5 = vld [vmem:[%s151_s0] sm:$0x3]  ;;  %80 = vperm.xlu0 %101, %v77_v4  }
   0x6   :  { %95 = vmatmul.mubr.msk.bf16.vlgmr.msra.gmra.mxu0 %vm22_vm2, %v20_v5 }
   0x8   :  { %v70_v6 = vld [vmem:[%s149_s3] sm:$0x7] }
  0x7e   :  { %v81_v12 = vpop.permute.xlu0 %80 }
  0xc6   :  { %v64_v7 = vpop.f32.mrf.mxu0 }
  0xc7   :  { %v71_v8 = vadd.f32 %v70_v6, %v64_v7 }
  0xc8   :  { %v96_v9 = vpop.f32.mrf.mxu0 }
  0xc9   :  { %72 = vst [vmem:[%s149_s3] sm:$0x7] %v71_v8 }
  0xca   :  { %v67_v10 = vpop.f32.mrf.mxu0 }
  0xcc   :  { %v97_v11 = vpop.f32.mrf.mxu0 }
  0xd0   :  { %v76_v13 = vld [vmem:[%s149_s3] sm:$0x7] }
  0xd1   :  { %v83_v14 = vadd.f32 %v81_v12, %v76_v13 }
  0xd3   :  { %84 = vst [vmem:[%s149_s3] sm:$0x7] %v83_v14 }

</bundles_post_ra>
